<compile_context>
chip_gen: v7x
topology: tpu7x:2x2x1
jax: 0.10.0
libtpu: 0.0.40
codegen_flags: <defaults>
</compile_context>

<pallas_src>
import functools

import jax
import jax.numpy as jnp
import numpy as np
from jax import lax
from jax.experimental import pallas as pl
from jax.experimental.pallas import tpu as pltpu

NEG_SLOPE = 0.2


def _round_up(x, m):
    return (x + m - 1) // m * m


# ----------------------------------------------------------------------------
# Pallas kernel 1: M-tiled GEMM (bf16 MXU inputs, f32 accum) + fused LeakyReLU
# ----------------------------------------------------------------------------
def _gemm_lrelu_kernel(x_ref, w_ref, o_ref, *, negative_slope):
    acc = jnp.dot(x_ref[...], w_ref[...], preferred_element_type=jnp.float32)
    acc = jnp.where(acc >= 0.0, acc, acc * negative_slope)
    o_ref[...] = acc.astype(o_ref.dtype)


def gemm_lrelu(patches, w_mat, *, negative_slope=NEG_SLOPE, tm=512):
    """patches (M,K) @ w_mat (K,Cout) with fused LeakyReLU, tiled over M."""
    M, K = patches.shape
    Kw, Cout = w_mat.shape
    assert K == Kw
    TM = min(tm, _round_up(M, 8))
    Mp = _round_up(M, TM)
    if Mp != M:
        patches = jnp.pad(patches, ((0, Mp - M), (0, 0)))

    out = pl.pallas_call(
        functools.partial(_gemm_lrelu_kernel, negative_slope=negative_slope),
        out_shape=jax.ShapeDtypeStruct((Mp, Cout), jnp.float32),
        grid=(Mp // TM,),
        in_specs=[
            pl.BlockSpec((TM, K), lambda i: (i, 0)),
            pl.BlockSpec((K, Cout), lambda i: (0, 0)),
        ],
        out_specs=pl.BlockSpec((TM, Cout), lambda i: (i, 0)),
        compiler_params=pltpu.CompilerParams(dimension_semantics=("parallel",)),
        cost_estimate=pl.CostEstimate(
            flops=2 * Mp * K * Cout,
            transcendentals=0,
            bytes_accessed=Mp * K * 2 + K * Cout * 2 + Mp * Cout * 4,
        ),
    )(patches.astype(jnp.bfloat16), w_mat.astype(jnp.bfloat16))
    return out if Mp == M else out[:M]


# ----------------------------------------------------------------------------
# Pallas kernel 2: fused [layer-4 conv + LReLU + final Cout=1 conv] head
# ----------------------------------------------------------------------------
def _head_kernel(p_ref, w4_ref, w5t_ref, g_ref, o_ref, *, negative_slope):
    # p_ref   : (TB*16, K4) bf16 - im2col rows of TB batch elems (16 spatial each)
    # w4_ref  : (K4, C4)    bf16 - layer-4 GEMM weights
    # w5t_ref : (TB*16, C4) f32  - final 4x4/Cout=1 weights, tiled per batch elem
    # g_ref   : (TB, TB*16) f32  - 0/1 group-sum selector (batch <- its 16 rows)
    # o_ref   : (TB, 1)     f32  - one score per batch element
    act = jnp.dot(p_ref[...], w4_ref[...], preferred_element_type=jnp.float32)
    act = jnp.where(act >= 0.0, act, act * negative_slope)
    contrib = act * w5t_ref[...]                                   # (TB*16, C4)
    grouped = jnp.dot(g_ref[...], contrib,
                      preferred_element_type=jnp.float32)          # (TB, C4)
    o_ref[...] = jnp.sum(grouped, axis=1, keepdims=True)


def head_fused(patches4, w4_mat, w5_hw, *, negative_slope=NEG_SLOPE, tb=8):
    """Fused conv4(4x4/s2/p1)+LReLU+conv5(4x4/s1/p0,Cout=1) -> (N,) scores.

    patches4: (N*16, K4) im2col rows of the 4x4 layer-4 output grid, rows
    ordered (n, ho, wo).  w4_mat: (K4, C4).  w5_hw: (16, C4), row = ho*4+wo.
    """
    M, K4 = patches4.shape
    taps, C4 = w5_hw.shape                      # 16 spatial positions (4x4 grid)
    assert M % taps == 0
    N = M // taps
    TB = tb
    Np = _round_up(N, TB)
    if Np != N:
        patches4 = jnp.pad(patches4, ((0, (Np - N) * taps), (0, 0)))

    w5_tiled = jnp.tile(w5_hw.astype(jnp.float32), (TB, 1))        # (TB*16, C4)
    group = (jnp.arange(TB)[:, None]
             == (jnp.arange(TB * taps)[None, :] // taps)).astype(jnp.float32)

    out = pl.pallas_call(
        functools.partial(_head_kernel, negative_slope=negative_slope),
        out_shape=jax.ShapeDtypeStruct((Np, 1), jnp.float32),
        grid=(Np // TB,),
        in_specs=[
            pl.BlockSpec((TB * taps, K4), lambda i: (i, 0)),
            pl.BlockSpec((K4, C4), lambda i: (0, 0)),
            pl.BlockSpec((TB * taps, C4), lambda i: (0, 0)),
            pl.BlockSpec((TB, TB * taps), lambda i: (0, 0)),
        ],
        out_specs=pl.BlockSpec((TB, 1), lambda i: (i, 0)),
        compiler_params=pltpu.CompilerParams(dimension_semantics=("parallel",)),
        cost_estimate=pl.CostEstimate(
            flops=2 * Np * taps * K4 * C4 + 3 * Np * taps * C4,
            transcendentals=0,
            bytes_accessed=Np * taps * K4 * 2 + K4 * C4 * 2
            + TB * taps * C4 * 4 + TB * TB * taps * 4 + Np * 4,
        ),
    )(patches4.astype(jnp.bfloat16), w4_mat.astype(jnp.bfloat16),
      w5_tiled, group)
    return out[:N, 0]


# ----------------------------------------------------------------------------
# Layout glue (plain JAX): space-to-depth im2col + weight repacking
# ----------------------------------------------------------------------------
def im2col_s2d(x, *, pad=1):
    """Patches for a 4x4/stride-2/pad-`pad` conv via space-to-depth(2).

    x: (N, H, W, C), H and W even.  Returns ((N*Ho*Wo, 16*C), (N, Ho, Wo)) with
    rows ordered (n, ho, wo) and K ordered (th, tw, dh, dw, c) where
    kh = 2*th + dh, kw = 2*tw + dw.  Only a 4x (not 16x) activation expansion.
    """
    N, H, W, C = x.shape
    assert H % 2 == 0 and W % 2 == 0
    xp = jnp.pad(x, ((0, 0), (pad, pad), (pad, pad), (0, 0)))
    Hp, Wp = H + 2 * pad, W + 2 * pad
    Hs, Ws = Hp // 2, Wp // 2
    s2d = xp.reshape(N, Hs, 2, Ws, 2, C).transpose(0, 1, 3, 2, 4, 5)
    s2d = s2d.reshape(N, Hs, Ws, 4 * C)          # channel order (dh, dw, c)
    Ho = (H + 2 * pad - 4) // 2 + 1              # == Hs - 1
    Wo = (W + 2 * pad - 4) // 2 + 1
    taps = [s2d[:, th:th + Ho, tw:tw + Wo, :] for th in range(2) for tw in range(2)]
    patches = jnp.stack(taps, axis=3)            # (N, Ho, Wo, 4, 4*C)
    return patches.reshape(N * Ho * Wo, 16 * C), (N, Ho, Wo)


def repack_weight_s2d(w_oihw):
    """PyTorch Conv2d weight (Cout, Cin, 4, 4) -> (16*Cin, Cout) GEMM matrix
    matching im2col_s2d's (th, tw, dh, dw, cin) K-ordering."""
    Cout, Cin, kH, kW = w_oihw.shape
    assert kH == 4 and kW == 4
    w = w_oihw.reshape(Cout, Cin, 2, 2, 2, 2)    # (Cout, Cin, th, dh, tw, dw)
    w = jnp.transpose(w, (2, 4, 3, 5, 1, 0))     # (th, tw, dh, dw, Cin, Cout)
    return w.reshape(16 * Cin, Cout)


def repack_head_weight(w5_oihw):
    """Final conv weight (1, C4, 4, 4) -> (16, C4) with row index kh*4+kw."""
    _, C4, kH, kW = w5_oihw.shape
    assert kH == 4 and kW == 4
    return jnp.transpose(w5_oihw[0], (1, 2, 0)).reshape(kH * kW, C4)


# ----------------------------------------------------------------------------
# Discriminator forward (wgangp / wgan conv path; all Conv2d are bias=False)
# ----------------------------------------------------------------------------
def init_params(key, nc, ndf):
    """DCGAN-style init: normal(0, 0.02), deterministic from `key`."""
    shapes = [
        (ndf, nc, 4, 4),
        (ndf * 2, ndf, 4, 4),
        (ndf * 4, ndf * 2, 4, 4),
        (ndf * 8, ndf * 4, 4, 4),
        (1, ndf * 8, 4, 4),
    ]
    keys = jax.random.split(key, len(shapes))
    return [0.02 * jax.random.normal(k, s, dtype=jnp.float32)
            for k, s in zip(keys, shapes)]


def discriminator_forward(params, x_nchw):
    w1, w2, w3, w4, w5 = params
    x = jnp.transpose(x_nchw, (0, 2, 3, 1)).astype(jnp.float32)   # NCHW -> NHWC
    # Layers 1-3: 4x4/stride-2/pad-1 conv + LeakyReLU(0.2) as M-tiled GEMMs.
    for w in (w1, w2, w3):
        patches, (N, Ho, Wo) = im2col_s2d(x)
        x = gemm_lrelu(patches, repack_weight_s2d(w)).reshape(N, Ho, Wo, w.shape[0])
    # Layers 4+5 fused: conv+LReLU onto the 4x4 grid, then the 4x4/Cout=1 conv
    # as an in-kernel epilogue reduction (no HBM round trip, no Cout=1 GEMM).
    patches4, (N, Ho, Wo) = im2col_s2d(x)        # Ho == Wo == 4
    assert Ho == 4 and Wo == 4, "conv arch structurally expects 64x64 inputs"
    return head_fused(patches4, repack_weight_s2d(w4), repack_head_weight(w5))
    # TODO(synk): for very small configs the three remaining pallas_calls could
    # also be fused into one kernel holding all activations in VMEM.


# ----------------------------------------------------------------------------
# Pure-JAX reference (lax.conv) for correctness check
# ----------------------------------------------------------------------------
def reference_forward(params, x_nchw):
    x = x_nchw.astype(jnp.float32)
    strides = [2, 2, 2, 2, 1]
    pads = [1, 1, 1, 1, 0]
    for i, w in enumerate(params):
        x = lax.conv_general_dilated(
            x, w,
            window_strides=(strides[i], strides[i]),
            padding=[(pads[i], pads[i]), (pads[i], pads[i])],
            dimension_numbers=("NCHW", "OIHW", "NCHW"),
        )
        if i < len(params) - 1:
            x = jnp.where(x >= 0.0, x, 0.2 * x)
    return x.reshape(-1)


if __name__ == "__main__":
    nc, ndf, batch, spatial = 3, 8, 2, 64   # conv arch expects 64x64 input
    key = jax.random.PRNGKey(0)
    k_params, k_x = jax.random.split(key)
    params = init_params(k_params, nc, ndf)
    x = jax.random.normal(k_x, (batch, nc, spatial, spatial), dtype=jnp.float32)

    fwd = jax.jit(discriminator_forward)
    out = jax.block_until_ready(fwd(params, x))
    ref = jax.block_until_ready(jax.jit(reference_forward)(params, x))

    assert out.shape == (batch,), f"bad output shape {out.shape}"
    np.testing.assert_allclose(np.asarray(out), np.asarray(ref),
                               rtol=5e-2, atol=5e-4)
    print("KERNEL_OK")
</pallas_src>

<mosaic_0001>
module attributes {stable_mosaic.version = 11 : i64} {
  func.func @_gemm_lrelu_kernel(%arg0: i32, %arg1: memref<512x48xbf16, #tpu.memory_space<vmem>>, %arg2: memref<48x8xbf16, #tpu.memory_space<vmem>>, %arg3: memref<512x8xf32, #tpu.memory_space<vmem>>) attributes {dimension_semantics = [#tpu.dimension_semantics<parallel>], iteration_bounds = array<i64: 4>, scalar_prefetch = 0 : i64, scratch_operands = 0 : i64, tpu.core_type = #tpu.core_type<tc>, window_params = [{transform_indices = @transform_0, window_bounds = array<i64: 512, 48>}, {pipeline_mode = #tpu.pipeline_mode<synchronous>, transform_indices = @transform_1, window_bounds = array<i64: 48, 8>}, {transform_indices = @transform_2, window_bounds = array<i64: 512, 8>}]} {
    %c0 = arith.constant 0 : index
    %c0_0 = arith.constant 0 : index
    %0 = vector.load %arg1[%c0, %c0_0] : memref<512x48xbf16, #tpu.memory_space<vmem>>, vector<512x48xbf16>
    %c0_1 = arith.constant 0 : index
    %c0_2 = arith.constant 0 : index
    %1 = vector.load %arg2[%c0_1, %c0_2] : memref<48x8xbf16, #tpu.memory_space<vmem>>, vector<48x8xbf16>
    %cst = arith.constant dense<0.000000e+00> : vector<512x8xf32>
    %2 = tpu.matmul %0, %1, %cst {dimension_numbers = #tpu.dot_dimension_numbers<[1], [0], [0], [1], [0, 0, 1, 1], [], []>} : vector<512x48xbf16>, vector<48x8xbf16>, vector<512x8xf32> -> vector<512x8xf32>
    %cst_3 = arith.constant 0.000000e+00 : f32
    %3 = vector.broadcast %cst_3 : f32 to vector<512x8xf32>
    %4 = arith.cmpf oge, %2, %3 : vector<512x8xf32>
    %cst_4 = arith.constant 2.000000e-01 : f32
    %5 = vector.broadcast %cst_4 : f32 to vector<512x8xf32>
    %6 = arith.mulf %2, %5 : vector<512x8xf32>
    %7 = arith.select %4, %2, %6 : vector<512x8xi1>, vector<512x8xf32>
    %c0_5 = arith.constant 0 : index
    %c0_6 = arith.constant 0 : index
    %8 = vector.load %arg3[%c0_5, %c0_6] : memref<512x8xf32, #tpu.memory_space<vmem>>, vector<512x8xf32>
    tpu.vector_store %arg3[%c0_5, %c0_6], %7 {strides = array<i32>} : memref<512x8xf32, #tpu.memory_space<vmem>>, vector<512x8xf32>,
    return
  }
  func.func @transform_0(%arg0: i32) -> (i32, i32) {
    %c0_i32 = arith.constant 0 : i32
    %c0_i32_0 = arith.constant 0 : i32
    return %arg0, %c0_i32 : i32, i32
  }
  func.func @transform_1(%arg0: i32) -> (i32, i32) {
    %c0_i32 = arith.constant 0 : i32
    %c0_i32_0 = arith.constant 0 : i32
    %c0_i32_1 = arith.constant 0 : i32
    return %c0_i32, %c0_i32_0 : i32, i32
  }
  func.func @transform_2(%arg0: i32) -> (i32, i32) {
    %c0_i32 = arith.constant 0 : i32
    %c0_i32_0 = arith.constant 0 : i32
    return %arg0, %c0_i32 : i32, i32
  }
}

module attributes {stable_mosaic.version = 11 : i64} {
  func.func @_gemm_lrelu_kernel(%arg0: i32, %arg1: memref<512x128xbf16, #tpu.memory_space<vmem>>, %arg2: memref<128x16xbf16, #tpu.memory_space<vmem>>, %arg3: memref<512x16xf32, #tpu.memory_space<vmem>>) attributes {dimension_semantics = [#tpu.dimension_semantics<parallel>], iteration_bounds = array<i64: 1>, scalar_prefetch = 0 : i64, scratch_operands = 0 : i64, tpu.core_type = #tpu.core_type<tc>, window_params = [{transform_indices = @transform_0, window_bounds = array<i64: 512, 128>}, {pipeline_mode = #tpu.pipeline_mode<synchronous>, transform_indices = @transform_1, window_bounds = array<i64: 128, 16>}, {transform_indices = @transform_2, window_bounds = array<i64: 512, 16>}]} {
    %c0 = arith.constant 0 : index
    %c0_0 = arith.constant 0 : index
    %0 = vector.load %arg1[%c0, %c0_0] : memref<512x128xbf16, #tpu.memory_space<vmem>>, vector<512x128xbf16>
    %c0_1 = arith.constant 0 : index
    %c0_2 = arith.constant 0 : index
    %1 = vector.load %arg2[%c0_1, %c0_2] : memref<128x16xbf16, #tpu.memory_space<vmem>>, vector<128x16xbf16>
    %cst = arith.constant dense<0.000000e+00> : vector<512x16xf32>
    %2 = tpu.matmul %0, %1, %cst {dimension_numbers = #tpu.dot_dimension_numbers<[1], [0], [0], [1], [0, 0, 1, 1], [], []>} : vector<512x128xbf16>, vector<128x16xbf16>, vector<512x16xf32> -> vector<512x16xf32>
    %cst_3 = arith.constant 0.000000e+00 : f32
    %3 = vector.broadcast %cst_3 : f32 to vector<512x16xf32>
    %4 = arith.cmpf oge, %2, %3 : vector<512x16xf32>
    %cst_4 = arith.constant 2.000000e-01 : f32
    %5 = vector.broadcast %cst_4 : f32 to vector<512x16xf32>
    %6 = arith.mulf %2, %5 : vector<512x16xf32>
    %7 = arith.select %4, %2, %6 : vector<512x16xi1>, vector<512x16xf32>
    %c0_5 = arith.constant 0 : index
    %c0_6 = arith.constant 0 : index
    %8 = vector.load %arg3[%c0_5, %c0_6] : memref<512x16xf32, #tpu.memory_space<vmem>>, vector<512x16xf32>
    tpu.vector_store %arg3[%c0_5, %c0_6], %7 {strides = array<i32>} : memref<512x16xf32, #tpu.memory_space<vmem>>, vector<512x16xf32>,
    return
  }
  func.func @transform_0(%arg0: i32) -> (i32, i32) {
    %c0_i32 = arith.constant 0 : i32
    %c0_i32_0 = arith.constant 0 : i32
    return %arg0, %c0_i32 : i32, i32
  }
  func.func @transform_1(%arg0: i32) -> (i32, i32) {
    %c0_i32 = arith.constant 0 : i32
    %c0_i32_0 = arith.constant 0 : i32
    %c0_i32_1 = arith.constant 0 : i32
    return %c0_i32, %c0_i32_0 : i32, i32
  }
  func.func @transform_2(%arg0: i32) -> (i32, i32) {
    %c0_i32 = arith.constant 0 : i32
    %c0_i32_0 = arith.constant 0 : i32
    return %arg0, %c0_i32 : i32, i32
  }
}

module attributes {stable_mosaic.version = 11 : i64} {
  func.func @_gemm_lrelu_kernel(%arg0: i32, %arg1: memref<128x256xbf16, #tpu.memory_space<vmem>>, %arg2: memref<256x32xbf16, #tpu.memory_space<vmem>>, %arg3: memref<128x32xf32, #tpu.memory_space<vmem>>) attributes {dimension_semantics = [#tpu.dimension_semantics<parallel>], iteration_bounds = array<i64: 1>, scalar_prefetch = 0 : i64, scratch_operands = 0 : i64, tpu.core_type = #tpu.core_type<tc>, window_params = [{transform_indices = @transform_0, window_bounds = array<i64: 128, 256>}, {pipeline_mode = #tpu.pipeline_mode<synchronous>, transform_indices = @transform_1, window_bounds = array<i64: 256, 32>}, {transform_indices = @transform_2, window_bounds = array<i64: 128, 32>}]} {
    %c0 = arith.constant 0 : index
    %c0_0 = arith.constant 0 : index
    %0 = vector.load %arg1[%c0, %c0_0] : memref<128x256xbf16, #tpu.memory_space<vmem>>, vector<128x256xbf16>
    %c0_1 = arith.constant 0 : index
    %c0_2 = arith.constant 0 : index
    %1 = vector.load %arg2[%c0_1, %c0_2] : memref<256x32xbf16, #tpu.memory_space<vmem>>, vector<256x32xbf16>
    %cst = arith.constant dense<0.000000e+00> : vector<128x32xf32>
    %2 = tpu.matmul %0, %1, %cst {dimension_numbers = #tpu.dot_dimension_numbers<[1], [0], [0], [1], [0, 0, 1, 1], [], []>} : vector<128x256xbf16>, vector<256x32xbf16>, vector<128x32xf32> -> vector<128x32xf32>
    %cst_3 = arith.constant 0.000000e+00 : f32
    %3 = vector.broadcast %cst_3 : f32 to vector<128x32xf32>
    %4 = arith.cmpf oge, %2, %3 : vector<128x32xf32>
    %cst_4 = arith.constant 2.000000e-01 : f32
    %5 = vector.broadcast %cst_4 : f32 to vector<128x32xf32>
    %6 = arith.mulf %2, %5 : vector<128x32xf32>
    %7 = arith.select %4, %2, %6 : vector<128x32xi1>, vector<128x32xf32>
    %c0_5 = arith.constant 0 : index
    %c0_6 = arith.constant 0 : index
    %8 = vector.load %arg3[%c0_5, %c0_6] : memref<128x32xf32, #tpu.memory_space<vmem>>, vector<128x32xf32>
    tpu.vector_store %arg3[%c0_5, %c0_6], %7 {strides = array<i32>} : memref<128x32xf32, #tpu.memory_space<vmem>>, vector<128x32xf32>,
    return
  }
  func.func @transform_0(%arg0: i32) -> (i32, i32) {
    %c0_i32 = arith.constant 0 : i32
    %c0_i32_0 = arith.constant 0 : i32
    return %arg0, %c0_i32 : i32, i32
  }
  func.func @transform_1(%arg0: i32) -> (i32, i32) {
    %c0_i32 = arith.constant 0 : i32
    %c0_i32_0 = arith.constant 0 : i32
    %c0_i32_1 = arith.constant 0 : i32
    return %c0_i32, %c0_i32_0 : i32, i32
  }
  func.func @transform_2(%arg0: i32) -> (i32, i32) {
    %c0_i32 = arith.constant 0 : i32
    %c0_i32_0 = arith.constant 0 : i32
    return %arg0, %c0_i32 : i32, i32
  }
}

module attributes {stable_mosaic.version = 11 : i64} {
  func.func @_head_kernel(%arg0: i32, %arg1: memref<128x512xbf16, #tpu.memory_space<vmem>>, %arg2: memref<512x64xbf16, #tpu.memory_space<vmem>>, %arg3: memref<128x64xf32, #tpu.memory_space<vmem>>, %arg4: memref<8x128xf32, #tpu.memory_space<vmem>>, %arg5: memref<8x1xf32, #tpu.memory_space<vmem>>) attributes {dimension_semantics = [#tpu.dimension_semantics<parallel>], iteration_bounds = array<i64: 1>, scalar_prefetch = 0 : i64, scratch_operands = 0 : i64, tpu.core_type = #tpu.core_type<tc>, window_params = [{transform_indices = @transform_0, window_bounds = array<i64: 128, 512>}, {pipeline_mode = #tpu.pipeline_mode<synchronous>, transform_indices = @transform_1, window_bounds = array<i64: 512, 64>}, {pipeline_mode = #tpu.pipeline_mode<synchronous>, transform_indices = @transform_2, window_bounds = array<i64: 128, 64>}, {pipeline_mode = #tpu.pipeline_mode<synchronous>, transform_indices = @transform_3, window_bounds = array<i64: 8, 128>}, {transform_indices = @transform_4, window_bounds = array<i64: 8, 1>}]} {
    %c0 = arith.constant 0 : index
    %c0_0 = arith.constant 0 : index
    %0 = vector.load %arg1[%c0, %c0_0] : memref<128x512xbf16, #tpu.memory_space<vmem>>, vector<128x512xbf16>
    %c0_1 = arith.constant 0 : index
    %c0_2 = arith.constant 0 : index
    %1 = vector.load %arg2[%c0_1, %c0_2] : memref<512x64xbf16, #tpu.memory_space<vmem>>, vector<512x64xbf16>
    %cst = arith.constant dense<0.000000e+00> : vector<128x64xf32>
    %2 = tpu.matmul %0, %1, %cst {dimension_numbers = #tpu.dot_dimension_numbers<[1], [0], [0], [1], [0, 0, 1, 1], [], []>} : vector<128x512xbf16>, vector<512x64xbf16>, vector<128x64xf32> -> vector<128x64xf32>
    %cst_3 = arith.constant 0.000000e+00 : f32
    %3 = vector.broadcast %cst_3 : f32 to vector<128x64xf32>
    %4 = arith.cmpf oge, %2, %3 : vector<128x64xf32>
    %cst_4 = arith.constant 2.000000e-01 : f32
    %5 = vector.broadcast %cst_4 : f32 to vector<128x64xf32>
    %6 = arith.mulf %2, %5 : vector<128x64xf32>
    %7 = arith.select %4, %2, %6 : vector<128x64xi1>, vector<128x64xf32>
    %c0_5 = arith.constant 0 : index
    %c0_6 = arith.constant 0 : index
    %8 = vector.load %arg3[%c0_5, %c0_6] : memref<128x64xf32, #tpu.memory_space<vmem>>, vector<128x64xf32>
    %9 = arith.mulf %7, %8 : vector<128x64xf32>
    %c0_7 = arith.constant 0 : index
    %c0_8 = arith.constant 0 : index
    %10 = vector.load %arg4[%c0_7, %c0_8] : memref<8x128xf32, #tpu.memory_space<vmem>>, vector<8x128xf32>
    %cst_9 = arith.constant dense<0.000000e+00> : vector<8x64xf32>
    %11 = tpu.matmul %10, %9, %cst_9 {dimension_numbers = #tpu.dot_dimension_numbers<[1], [0], [0], [1], [0, 0, 1, 1], [], []>} : vector<8x128xf32>, vector<128x64xf32>, vector<8x64xf32> -> vector<8x64xf32>
    %cst_10 = arith.constant dense<0.000000e+00> : vector<8xf32>
    %12 = vector.multi_reduction <add>, %11, %cst_10 [1] : vector<8x64xf32> to vector<8xf32>
    %13 = vector.shape_cast %12 : vector<8xf32> to vector<8x1xf32>
    %c0_11 = arith.constant 0 : index
    %c0_12 = arith.constant 0 : index
    %14 = vector.load %arg5[%c0_11, %c0_12] : memref<8x1xf32, #tpu.memory_space<vmem>>, vector<8x1xf32>
    tpu.vector_store %arg5[%c0_11, %c0_12], %13 {strides = array<i32>} : memref<8x1xf32, #tpu.memory_space<vmem>>, vector<8x1xf32>,
    return
  }
  func.func @transform_0(%arg0: i32) -> (i32, i32) {
    %c0_i32 = arith.constant 0 : i32
    %c0_i32_0 = arith.constant 0 : i32
    return %arg0, %c0_i32 : i32, i32
  }
  func.func @transform_1(%arg0: i32) -> (i32, i32) {
    %c0_i32 = arith.constant 0 : i32
    %c0_i32_0 = arith.constant 0 : i32
    %c0_i32_1 = arith.constant 0 : i32
    return %c0_i32, %c0_i32_0 : i32, i32
  }
  func.func @transform_2(%arg0: i32) -> (i32, i32) {
    %c0_i32 = arith.constant 0 : i32
    %c0_i32_0 = arith.constant 0 : i32
    %c0_i32_1 = arith.constant 0 : i32
    return %c0_i32, %c0_i32_0 : i32, i32
  }
  func.func @transform_3(%arg0: i32) -> (i32, i32) {
    %c0_i32 = arith.constant 0 : i32
    %c0_i32_0 = arith.constant 0 : i32
    %c0_i32_1 = arith.constant 0 : i32
    return %c0_i32, %c0_i32_0 : i32, i32
  }
  func.func @transform_4(%arg0: i32) -> (i32, i32) {
    %c0_i32 = arith.constant 0 : i32
    %c0_i32_0 = arith.constant 0 : i32
    return %arg0, %c0_i32 : i32, i32
  }
}

</mosaic_0001>

<bundles_post_ra>
// kernel: discriminator_forward.4
= control target key start
LH: loop header
LB: loop body
LE: loop exit
PB: predicated region body
PF: predicated region fallthrough
CT: control target
= control target key end

     0   :  { %s1350_s9 = smov 0   ;;  %s1576_s0 = inlined_call_operand.vmem [shape: bf16[2048,48], index: 0, kind: input, shape index: {}]   ;;  %s1577_s1 = inlined_call_operand.vmem [shape: bf16[48,8], index: 1, kind: input, shape index: {}]   ;;  %s1578_s2 = inlined_call_operand.vmem [shape: f32[2048,8], index: 2, kind: output, shape index: {}]  }
   0x1 LB: > { %s1095_s10 = sadd.s32 4294967295, %s1333_s9   ;;  %p1099_p0 = scmp.ge.s32.totalorder %s1333_s9, 1  ;;  %s1333_s9 = sphi %s1350_s9, %s12_s9  }
   0x2   : > { %p113_p1 = scmp.lt.s32.totalorder %s1333_s9, 5 }
   0x4   : > { %p114_p2 = pnand %p1099_p0, %p113_p1 }
   0x5   : > { %v1292_v0 = vld [vmem:[%s1577_s1] sm:$0xff] (!%p114_p2)   ;;  %s1100_s13 = sshll.u32 (!%p114_p2), %s1095_s10, 6  ;;  %v1293_v1 = vld [vmem:[%s1577_s1 + $0x8] sm:$0xff] (!%p114_p2)   ;;  %v1294_v2 = vld [vmem:[%s1577_s1 + $0x10] sm:$0xff] (!%p114_p2)   ;;  %vm396_vm0 = vcmask (!%p114_p2), 392192   ;;  %vm974_vm1 = vcmask (!%p114_p2), 64512  }
   0x6   : > { %117 = sbr.rel (%p114_p2) target bundleno = 296 (0x128), region = 28  ;;  %p136_p3 = scmp.lt.s32.totalorder (!%p114_p2), %s1100_s13, 255  ;;  %1208 = vmatprep.subr.bf16.mxu0 (!%p114_p2), %v1292_v0  ;;  %1278 = vmatprep.subr.bf16.mxu1 (!%p114_p2), %v1292_v0 }
   0x7   : > { %1209 = vmatpush3.bf16.msra.mxu0 (!%p114_p2), %v1292_v0  ;;  %1281 = vmatpush3.bf16.msra.mxu1 (!%p114_p2), %v1292_v0 }
   0x8   : > { %1210 = vmatprep.subr.bf16.mxu0 (!%p114_p2), %v1293_v1  ;;  %1279 = vmatprep.subr.bf16.mxu1 (!%p114_p2), %v1293_v1 }
   0xb   : > { %1211 = vmatpush3.bf16.msra.mxu0 (!%p114_p2), %v1293_v1  ;;  %1282 = vmatpush3.bf16.msra.mxu1 (!%p114_p2), %v1293_v1 }
   0xc   : > { %1212 = vmatprep.subr.bf16.mxu0 (!%p114_p2), %v1294_v2  ;;  %1280 = vmatprep.subr.bf16.mxu1 (!%p114_p2), %v1294_v2 }
   0xd   : > { %s1580_s13 = smov (!%p136_p3, %s1100_s13), 255 }
   0xe   : > { %s1101_s18 = sshll.u32 %s1580_s13, 2  ;;  %s1103_s22 = sshll.u32 %s1580_s13, 3 }
   0xf   : > { %s1373_s21 = scalar_lea.vmem %s1576_s0, %s1101_s18  ;;  %1213 = vmatpush3.bf16.msra.mxu0 %v1294_v2  ;;  %1283 = vmatpush3.bf16.msra.mxu1 %v1294_v2  ;;  %s1443_s25 = scalar_lea.vmem %s1578_s2, %s1103_s22 }
  0x10   : > { %v1295_v3 = vld [vmem:[%s1373_s21] sm:$0xff]   ;;  %v1297_v5 = vld [vmem:[%s1373_s21 + $0x8] sm:$0xff]   ;;  %v1299_v7 = vld [vmem:[%s1373_s21 + $0x10] sm:$0xff]  }
  0x11   : > { %v1296_v4 = vld [vmem:[%s1373_s21 + $0x80] sm:$0xff]   ;;  %1214 = vmatprep.mubr.msk.bf16.mxu0 %vm396_vm0, %v1295_v3  ;;  %v1298_v6 = vld [vmem:[%s1373_s21 + $0x88] sm:$0xff]   ;;  %v1300_v8 = vld [vmem:[%s1373_s21 + $0x90] sm:$0xff]  }
  0x12   : > { %1246 = vmatprep.mubr.msk.bf16.mxu1 %vm396_vm0, %v1296_v4  ;;  %1215 = vmatmul.mubr.msk.bf16.vlgmr.msra.gmra.mrb[0].mxu0 %vm396_vm0, %v1297_v5  ;;  %v1301_v9 = vld [vmem:[%s1373_s21 + $0x18] sm:$0xff]   ;;  %v1303_v11 = vld [vmem:[%s1373_s21 + $0x20] sm:$0xff]   ;;  %v1305_v13 = vld [vmem:[%s1373_s21 + $0x28] sm:$0xff]  }
  0x13   : > { %1247 = vmatmul.mubr.msk.bf16.vlgmr.msra.gmra.mrb[0].mxu1 %vm396_vm0, %v1298_v6  ;;  %1218 = vmatprep.mubr.msk.bf16.mxu0 %vm396_vm0, %v1299_v7  ;;  %v1302_v10 = vld [vmem:[%s1373_s21 + $0x98] sm:$0xff]   ;;  %v1304_v12 = vld [vmem:[%s1373_s21 + $0xa0] sm:$0xff]   ;;  %v1306_v14 = vld [vmem:[%s1373_s21 + $0xa8] sm:$0xff]  }
  0x14   : > { %1250 = vmatprep.mubr.msk.bf16.mxu1 %vm396_vm0, %v1300_v8  ;;  %v1307_v15 = vld [vmem:[%s1373_s21 + $0x30] sm:$0xff]   ;;  %v1309_v17 = vld [vmem:[%s1373_s21 + $0x38] sm:$0xff]   ;;  %v1311_v19 = vld [vmem:[%s1373_s21 + $0x40] sm:$0xff]  }
  0x15   : > { %v1308_v16 = vld [vmem:[%s1373_s21 + $0xb0] sm:$0xff]   ;;  %v1310_v18 = vld [vmem:[%s1373_s21 + $0xb8] sm:$0xff]   ;;  %v1312_v20 = vld [vmem:[%s1373_s21 + $0xc0] sm:$0xff]  }
  0x16   : > { %v1313_v21 = vld [vmem:[%s1373_s21 + $0x48] sm:$0xff]   ;;  %v1315_v23 = vld [vmem:[%s1373_s21 + $0x50] sm:$0xff]   ;;  %v1317_v25 = vld [vmem:[%s1373_s21 + $0x58] sm:$0xff]  }
  0x17   : > { %v1314_v22 = vld [vmem:[%s1373_s21 + $0xc8] sm:$0xff]   ;;  %v1316_v24 = vld [vmem:[%s1373_s21 + $0xd0] sm:$0xff]   ;;  %v1318_v26 = vld [vmem:[%s1373_s21 + $0xd8] sm:$0xff]  }
  0x18   : > { %v1319_v27 = vld [vmem:[%s1373_s21 + $0x60] sm:$0xff]   ;;  %v1321_v29 = vld [vmem:[%s1373_s21 + $0x68] sm:$0xff]   ;;  %v1323_v31 = vld [vmem:[%s1373_s21 + $0x70] sm:$0xff]  }
  0x19   : > { %v1320_v28 = vld [vmem:[%s1373_s21 + $0xe0] sm:$0xff]   ;;  %v1322_v30 = vld [vmem:[%s1373_s21 + $0xe8] sm:$0xff]   ;;  %v1324_v32 = vld [vmem:[%s1373_s21 + $0xf0] sm:$0xff]  }
  0x1a   : > { %1219 = vmatmul.mubr.msk.bf16.gmra.mrb[4].mxu0 %vm396_vm0, %v1301_v9  ;;  %v1325_v33 = vld [vmem:[%s1373_s21 + $0x78] sm:$0xff]  }
  0x1b   : > { %1251 = vmatmul.mubr.msk.bf16.gmra.mrb[4].mxu1 %vm396_vm0, %v1302_v10  ;;  %1222 = vmatprep.mubr.msk.bf16.mxu0 %vm396_vm0, %v1303_v11  ;;  %v1326_v34 = vld [vmem:[%s1373_s21 + $0xf8] sm:$0xff]  }
  0x1c   : > { %1254 = vmatprep.mubr.msk.bf16.mxu1 %vm396_vm0, %v1304_v12 }
  0x22   : > { %1223 = vmatmul.mubr.msk.bf16.gmra.mrb[8].mxu0 %vm396_vm0, %v1305_v13 }
  0x23   : > { %1255 = vmatmul.mubr.msk.bf16.gmra.mrb[8].mxu1 %vm396_vm0, %v1306_v14  ;;  %1226 = vmatprep.mubr.msk.bf16.mxu0 %vm396_vm0, %v1307_v15 }
  0x24   : > { %1258 = vmatprep.mubr.msk.bf16.mxu1 %vm396_vm0, %v1308_v16 }
  0x2a   : > { %1227 = vmatmul.mubr.msk.bf16.gmra.mrb[12].mxu0 %vm396_vm0, %v1309_v17 }
  0x2b   : > { %1259 = vmatmul.mubr.msk.bf16.gmra.mrb[12].mxu1 %vm396_vm0, %v1310_v18  ;;  %1230 = vmatprep.mubr.msk.bf16.mxu0 %vm396_vm0, %v1311_v19 }
  0x2c   : > { %1262 = vmatprep.mubr.msk.bf16.mxu1 %vm396_vm0, %v1312_v20 }
  0x32   : > { %1231 = vmatmul.mubr.msk.bf16.gmra.mrb[16].mxu0 %vm396_vm0, %v1313_v21 }
  0x33   : > { %1263 = vmatmul.mubr.msk.bf16.gmra.mrb[16].mxu1 %vm396_vm0, %v1314_v22  ;;  %1234 = vmatprep.mubr.msk.bf16.mxu0 %vm396_vm0, %v1315_v23 }
  0x34   : > { %1266 = vmatprep.mubr.msk.bf16.mxu1 %vm396_vm0, %v1316_v24 }
  0x3a   : > { %1235 = vmatmul.mubr.msk.bf16.gmra.mrb[20].mxu0 %vm396_vm0, %v1317_v25 }
  0x3b   : > { %1267 = vmatmul.mubr.msk.bf16.gmra.mrb[20].mxu1 %vm396_vm0, %v1318_v26  ;;  %1238 = vmatprep.mubr.msk.bf16.mxu0 %vm396_vm0, %v1319_v27 }
  0x3c   : > { %1270 = vmatprep.mubr.msk.bf16.mxu1 %vm396_vm0, %v1320_v28 }
  0x42   : > { %1239 = vmatmul.mubr.msk.bf16.gmra.mrb[24].mxu0 %vm396_vm0, %v1321_v29 }
  0x43   : > { %1271 = vmatmul.mubr.msk.bf16.gmra.mrb[24].mxu1 %vm396_vm0, %v1322_v30  ;;  %1242 = vmatprep.mubr.msk.bf16.mxu0 %vm396_vm0, %v1323_v31 }
  0x44   : > { %1274 = vmatprep.mubr.msk.bf16.mxu1 %vm396_vm0, %v1324_v32 }
  0x4a   : > { %1243 = vmatmul.mubr.msk.bf16.gmra.mrb[28].mxu0 %vm396_vm0, %v1325_v33 }
  0x4b   : > { %1275 = vmatmul.mubr.msk.bf16.gmra.mrb[28].mxu1 %vm396_vm0, %v1326_v34 }
  0xe5   : > { %v1216_v35 = vpop.f32.mrb[0].mxu0 }
  0xe6   : > { %v1248_v36 = vpop.f32.mrb[0].mxu1  ;;  %vm784_vm2 = vcmp.ge.f32.partialorder %v1216_v35, 0.0  ;;  %v848_v37 = vmul.f32 0.2, %v1216_v35  ;;  %v527_v39 = vpop.f32.mrb[1].mxu0 }
  0xe7   : > { %vm816_vm3 = vcmp.ge.f32.partialorder %v1248_v36, 0.0  ;;  %v880_v38 = vmul.f32 0.2, %v1248_v36  ;;  %v655_v40 = vpop.f32.mrb[1].mxu1  ;;  %vm782_vm4 = vcmp.ge.f32.partialorder %v527_v39, 0.0  ;;  %v1217_v44 = vpop.f32.mrb[2].mxu0 }
  0xe8   : > { %v912_v41 = vsel %vm784_vm2, %v1216_v35, %v848_v37  ;;  %v846_v43 = vmul.f32 0.2, %v527_v39  ;;  %v1249_v45 = vpop.f32.mrb[2].mxu1  ;;  %vm814_vm5 = vcmp.ge.f32.partialorder %v655_v40, 0.0  ;;  %v878_v46 = vmul.f32 0.2, %v655_v40 }
  0xe9   : > { %v944_v42 = vsel %vm816_vm3, %v1248_v36, %v880_v38  ;;  %977 = vst.msk [vmem:[%s1443_s25 + $0x10] sm:$0xff] %vm974_vm1, %v912_v41  ;;  %vm785_vm6 = vcmp.ge.f32.partialorder %v1217_v44, 0.0  ;;  %v849_v47 = vmul.f32 0.2, %v1217_v44  ;;  %vm817_vm7 = vcmp.ge.f32.partialorder %v1249_v45, 0.0  ;;  %v530_v50 = vpop.f32.mrb[3].mxu0 }
  0xea   : > { %1009 = vst.msk [vmem:[%s1443_s25 + $0x110] sm:$0xff] %vm974_vm1, %v944_v42  ;;  %v910_v48 = vsel %vm782_vm4, %v527_v39, %v846_v43  ;;  %v881_v49 = vmul.f32 0.2, %v1249_v45  ;;  %v658_v51 = vpop.f32.mrb[3].mxu1  ;;  %v942_v52 = vsel %vm814_vm5, %v655_v40, %v878_v46  ;;  %vm783_vm8 = vcmp.ge.f32.partialorder %v530_v50, 0.0 }
  0xeb   : > { %975 = vst.msk [vmem:[%s1443_s25] sm:$0xff] %vm974_vm1, %v910_v48  ;;  %v913_v53 = vsel %vm785_vm6, %v1217_v44, %v849_v47  ;;  %v847_v54 = vmul.f32 0.2, %v530_v50  ;;  %1007 = vst.msk [vmem:[%s1443_s25 + $0x100] sm:$0xff] %vm974_vm1, %v942_v52  ;;  %vm815_vm9 = vcmp.ge.f32.partialorder %v658_v51, 0.0 }
  0xec   : > { %978 = vst.msk [vmem:[%s1443_s25 + $0x18] sm:$0xff] %vm974_vm1, %v913_v53  ;;  %v945_v55 = vsel %vm817_vm7, %v1249_v45, %v881_v49  ;;  %v879_v56 = vmul.f32 0.2, %v658_v51 }
  0xed   : > { %1010 = vst.msk [vmem:[%s1443_s25 + $0x118] sm:$0xff] %vm974_vm1, %v945_v55  ;;  %v911_v57 = vsel %vm783_vm8, %v530_v50, %v847_v54  ;;  %v1220_v58 = vpop.f32.mrb[4].mxu0 }
  0xee   : > { %v1252_v59 = vpop.f32.mrb[4].mxu1  ;;  %976 = vst.msk [vmem:[%s1443_s25 + $0x8] sm:$0xff] %vm974_vm1, %v911_v57  ;;  %v943_v60 = vsel %vm815_vm9, %v658_v51, %v879_v56  ;;  %vm788_vm10 = vcmp.ge.f32.partialorder %v1220_v58, 0.0  ;;  %v852_v61 = vmul.f32 0.2, %v1220_v58  ;;  %v543_v62 = vpop.f32.mrb[5].mxu0 }
  0xef   : > { %vm820_vm11 = vcmp.ge.f32.partialorder %v1252_v59, 0.0  ;;  %v671_v63 = vpop.f32.mrb[5].mxu1  ;;  %1008 = vst.msk [vmem:[%s1443_s25 + $0x108] sm:$0xff] %vm974_vm1, %v943_v60  ;;  %v884_v0 = vmul.f32 0.2, %v1252_v59  ;;  %vm786_vm12 = vcmp.ge.f32.partialorder %v543_v62, 0.0 }
  0xf0   : > { %v850_v1 = vmul.f32 0.2, %v543_v62  ;;  %vm818_vm13 = vcmp.ge.f32.partialorder %v671_v63, 0.0  ;;  %v916_v2 = vsel %vm788_vm10, %v1220_v58, %v852_v61  ;;  %v882_v3 = vmul.f32 0.2, %v671_v63  ;;  %v1221_v4 = vpop.f32.mrb[6].mxu0 }
  0xf1   : > { %v1253_v5 = vpop.f32.mrb[6].mxu1  ;;  %981 = vst.msk [vmem:[%s1443_s25 + $0x30] sm:$0xff] %vm974_vm1, %v916_v2  ;;  %v948_v6 = vsel %vm820_vm11, %v1252_v59, %v884_v0  ;;  %vm789_vm14 = vcmp.ge.f32.partialorder %v1221_v4, 0.0  ;;  %v853_v8 = vmul.f32 0.2, %v1221_v4  ;;  %v546_v9 = vpop.f32.mrb[7].mxu0 }
  0xf2   : > { %v914_v7 = vsel %vm786_vm12, %v543_v62, %v850_v1  ;;  %v674_v10 = vpop.f32.mrb[7].mxu1  ;;  %1013 = vst.msk [vmem:[%s1443_s25 + $0x130] sm:$0xff] %vm974_vm1, %v948_v6  ;;  %v946_v11 = vsel %vm818_vm13, %v671_v63, %v882_v3  ;;  %vm821_vm15 = vcmp.ge.f32.partialorder %v1253_v5, 0.0  ;;  %v885_v12 = vmul.f32 0.2, %v1253_v5 }
  0xf3   : > { %979 = vst.msk [vmem:[%s1443_s25 + $0x20] sm:$0xff] %vm974_vm1, %v914_v7  ;;  %vm787_vm0 = vcmp.ge.f32.partialorder %v546_v9, 0.0  ;;  %1011 = vst.msk [vmem:[%s1443_s25 + $0x120] sm:$0xff] %vm974_vm1, %v946_v11  ;;  %v917_v13 = vsel %vm789_vm14, %v1221_v4, %v853_v8  ;;  %v851_v14 = vmul.f32 0.2, %v546_v9  ;;  %vm819_vm2 = vcmp.ge.f32.partialorder %v674_v10, 0.0 }
  0xf4   : > { %v883_v15 = vmul.f32 0.2, %v674_v10  ;;  %982 = vst.msk [vmem:[%s1443_s25 + $0x38] sm:$0xff] %vm974_vm1, %v917_v13  ;;  %v949_v16 = vsel %vm821_vm15, %v1253_v5, %v885_v12 }
  0xf5   : > { %1014 = vst.msk [vmem:[%s1443_s25 + $0x138] sm:$0xff] %vm974_vm1, %v949_v16  ;;  %v915_v17 = vsel %vm787_vm0, %v546_v9, %v851_v14  ;;  %v1224_v19 = vpop.f32.mrb[8].mxu0 }
  0xf6   : > { %v947_v18 = vsel %vm819_vm2, %v674_v10, %v883_v15  ;;  %v1256_v20 = vpop.f32.mrb[8].mxu1  ;;  %980 = vst.msk [vmem:[%s1443_s25 + $0x28] sm:$0xff] %vm974_vm1, %v915_v17  ;;  %vm792_vm3 = vcmp.ge.f32.partialorder %v1224_v19, 0.0  ;;  %v856_v21 = vmul.f32 0.2, %v1224_v19  ;;  %v559_v23 = vpop.f32.mrb[9].mxu0 }
  0xf7   : > { %1012 = vst.msk [vmem:[%s1443_s25 + $0x128] sm:$0xff] %vm974_vm1, %v947_v18  ;;  %vm824_vm4 = vcmp.ge.f32.partialorder %v1256_v20, 0.0  ;;  %v888_v22 = vmul.f32 0.2, %v1256_v20  ;;  %v687_v24 = vpop.f32.mrb[9].mxu1  ;;  %vm790_vm5 = vcmp.ge.f32.partialorder %v559_v23, 0.0 }
  0xf8   : > { %v920_v25 = vsel %vm792_vm3, %v1224_v19, %v856_v21  ;;  %v854_v27 = vmul.f32 0.2, %v559_v23  ;;  %v1225_v28 = vpop.f32.mrb[10].mxu0  ;;  %v1257_v29 = vpop.f32.mrb[10].mxu1  ;;  %vm822_vm6 = vcmp.ge.f32.partialorder %v687_v24, 0.0 }
  0xf9   : > { %v952_v26 = vsel %vm824_vm4, %v1256_v20, %v888_v22  ;;  %985 = vst.msk [vmem:[%s1443_s25 + $0x50] sm:$0xff] %vm974_vm1, %v920_v25  ;;  %v886_v30 = vmul.f32 0.2, %v687_v24  ;;  %vm793_vm7 = vcmp.ge.f32.partialorder %v1225_v28, 0.0  ;;  %v857_v31 = vmul.f32 0.2, %v1225_v28 }
  0xfa   : > { %1017 = vst.msk [vmem:[%s1443_s25 + $0x150] sm:$0xff] %vm974_vm1, %v952_v26  ;;  %v918_v32 = vsel %vm790_vm5, %v559_v23, %v854_v27  ;;  %vm825_vm8 = vcmp.ge.f32.partialorder %v1257_v29, 0.0  ;;  %v889_v33 = vmul.f32 0.2, %v1257_v29  ;;  %v562_v34 = vpop.f32.mrb[11].mxu0  ;;  %v690_v35 = vpop.f32.mrb[11].mxu1 }
  0xfb   : > { %983 = vst.msk [vmem:[%s1443_s25 + $0x40] sm:$0xff] %vm974_vm1, %v918_v32  ;;  %v950_v36 = vsel %vm822_vm6, %v687_v24, %v886_v30  ;;  %v921_v37 = vsel %vm793_vm7, %v1225_v28, %v857_v31  ;;  %vm791_vm9 = vcmp.ge.f32.partialorder %v562_v34, 0.0  ;;  %v855_v38 = vmul.f32 0.2, %v562_v34 }
  0xfc   : > { %1015 = vst.msk [vmem:[%s1443_s25 + $0x140] sm:$0xff] %vm974_vm1, %v950_v36  ;;  %986 = vst.msk [vmem:[%s1443_s25 + $0x58] sm:$0xff] %vm974_vm1, %v921_v37  ;;  %v953_v39 = vsel %vm825_vm8, %v1257_v29, %v889_v33  ;;  %vm823_vm10 = vcmp.ge.f32.partialorder %v690_v35, 0.0  ;;  %v887_v40 = vmul.f32 0.2, %v690_v35 }
  0xfd   : > { %1018 = vst.msk [vmem:[%s1443_s25 + $0x158] sm:$0xff] %vm974_vm1, %v953_v39  ;;  %v919_v41 = vsel %vm791_vm9, %v562_v34, %v855_v38  ;;  %v1228_v42 = vpop.f32.mrb[12].mxu0 }
  0xfe   : > { %v1260_v43 = vpop.f32.mrb[12].mxu1  ;;  %984 = vst.msk [vmem:[%s1443_s25 + $0x48] sm:$0xff] %vm974_vm1, %v919_v41  ;;  %v951_v44 = vsel %vm823_vm10, %v690_v35, %v887_v40  ;;  %vm796_vm11 = vcmp.ge.f32.partialorder %v1228_v42, 0.0  ;;  %v860_v45 = vmul.f32 0.2, %v1228_v42  ;;  %v575_v46 = vpop.f32.mrb[13].mxu0 }
  0xff   : > { %vm828_vm12 = vcmp.ge.f32.partialorder %v1260_v43, 0.0  ;;  %v703_v47 = vpop.f32.mrb[13].mxu1  ;;  %1016 = vst.msk [vmem:[%s1443_s25 + $0x148] sm:$0xff] %vm974_vm1, %v951_v44  ;;  %v892_v48 = vmul.f32 0.2, %v1260_v43  ;;  %vm794_vm13 = vcmp.ge.f32.partialorder %v575_v46, 0.0 }
 0x100   : > { %v858_v49 = vmul.f32 0.2, %v575_v46  ;;  %vm826_vm14 = vcmp.ge.f32.partialorder %v703_v47, 0.0  ;;  %v924_v50 = vsel %vm796_vm11, %v1228_v42, %v860_v45  ;;  %v890_v51 = vmul.f32 0.2, %v703_v47  ;;  %v1229_v52 = vpop.f32.mrb[14].mxu0 }
 0x101   : > { %v1261_v53 = vpop.f32.mrb[14].mxu1  ;;  %989 = vst.msk [vmem:[%s1443_s25 + $0x70] sm:$0xff] %vm974_vm1, %v924_v50  ;;  %v956_v54 = vsel %vm828_vm12, %v1260_v43, %v892_v48  ;;  %vm797_vm15 = vcmp.ge.f32.partialorder %v1229_v52, 0.0  ;;  %v861_v56 = vmul.f32 0.2, %v1229_v52  ;;  %v578_v57 = vpop.f32.mrb[15].mxu0 }
 0x102   : > { %v922_v55 = vsel %vm794_vm13, %v575_v46, %v858_v49  ;;  %v706_v58 = vpop.f32.mrb[15].mxu1  ;;  %1021 = vst.msk [vmem:[%s1443_s25 + $0x170] sm:$0xff] %vm974_vm1, %v956_v54  ;;  %v954_v59 = vsel %vm826_vm14, %v703_v47, %v890_v51  ;;  %vm829_vm0 = vcmp.ge.f32.partialorder %v1261_v53, 0.0  ;;  %v893_v60 = vmul.f32 0.2, %v1261_v53 }
 0x103   : > { %987 = vst.msk [vmem:[%s1443_s25 + $0x60] sm:$0xff] %vm974_vm1, %v922_v55  ;;  %vm795_vm2 = vcmp.ge.f32.partialorder %v578_v57, 0.0  ;;  %1019 = vst.msk [vmem:[%s1443_s25 + $0x160] sm:$0xff] %vm974_vm1, %v954_v59  ;;  %v925_v61 = vsel %vm797_vm15, %v1229_v52, %v861_v56  ;;  %v859_v62 = vmul.f32 0.2, %v578_v57  ;;  %vm827_vm3 = vcmp.ge.f32.partialorder %v706_v58, 0.0 }
 0x104   : > { %v891_v63 = vmul.f32 0.2, %v706_v58  ;;  %990 = vst.msk [vmem:[%s1443_s25 + $0x78] sm:$0xff] %vm974_vm1, %v925_v61  ;;  %v957_v0 = vsel %vm829_vm0, %v1261_v53, %v893_v60 }
 0x105   : > { %1022 = vst.msk [vmem:[%s1443_s25 + $0x178] sm:$0xff] %vm974_vm1, %v957_v0  ;;  %v923_v1 = vsel %vm795_vm2, %v578_v57, %v859_v62  ;;  %v1232_v3 = vpop.f32.mrb[16].mxu0 }
 0x106   : > { %v955_v2 = vsel %vm827_vm3, %v706_v58, %v891_v63  ;;  %v1264_v4 = vpop.f32.mrb[16].mxu1  ;;  %988 = vst.msk [vmem:[%s1443_s25 + $0x68] sm:$0xff] %vm974_vm1, %v923_v1  ;;  %vm800_vm4 = vcmp.ge.f32.partialorder %v1232_v3, 0.0  ;;  %v864_v5 = vmul.f32 0.2, %v1232_v3  ;;  %v591_v7 = vpop.f32.mrb[17].mxu0 }
 0x107   : > { %1020 = vst.msk [vmem:[%s1443_s25 + $0x168] sm:$0xff] %vm974_vm1, %v955_v2  ;;  %vm832_vm5 = vcmp.ge.f32.partialorder %v1264_v4, 0.0  ;;  %v896_v6 = vmul.f32 0.2, %v1264_v4  ;;  %v719_v8 = vpop.f32.mrb[17].mxu1  ;;  %vm798_vm6 = vcmp.ge.f32.partialorder %v591_v7, 0.0 }
 0x108   : > { %v928_v9 = vsel %vm800_vm4, %v1232_v3, %v864_v5  ;;  %v862_v11 = vmul.f32 0.2, %v591_v7  ;;  %v1233_v12 = vpop.f32.mrb[18].mxu0  ;;  %v1265_v13 = vpop.f32.mrb[18].mxu1  ;;  %vm830_vm7 = vcmp.ge.f32.partialorder %v719_v8, 0.0 }
 0x109   : > { %v960_v10 = vsel %vm832_vm5, %v1264_v4, %v896_v6  ;;  %993 = vst.msk [vmem:[%s1443_s25 + $0x90] sm:$0xff] %vm974_vm1, %v928_v9  ;;  %v894_v14 = vmul.f32 0.2, %v719_v8  ;;  %vm801_vm8 = vcmp.ge.f32.partialorder %v1233_v12, 0.0  ;;  %v865_v15 = vmul.f32 0.2, %v1233_v12 }
 0x10a   : > { %1025 = vst.msk [vmem:[%s1443_s25 + $0x190] sm:$0xff] %vm974_vm1, %v960_v10  ;;  %v926_v16 = vsel %vm798_vm6, %v591_v7, %v862_v11  ;;  %vm833_vm9 = vcmp.ge.f32.partialorder %v1265_v13, 0.0  ;;  %v897_v17 = vmul.f32 0.2, %v1265_v13  ;;  %v594_v18 = vpop.f32.mrb[19].mxu0  ;;  %v722_v19 = vpop.f32.mrb[19].mxu1 }
 0x10b   : > { %991 = vst.msk [vmem:[%s1443_s25 + $0x80] sm:$0xff] %vm974_vm1, %v926_v16  ;;  %v958_v20 = vsel %vm830_vm7, %v719_v8, %v894_v14  ;;  %v929_v21 = vsel %vm801_vm8, %v1233_v12, %v865_v15  ;;  %vm799_vm10 = vcmp.ge.f32.partialorder %v594_v18, 0.0  ;;  %v863_v22 = vmul.f32 0.2, %v594_v18 }
 0x10c   : > { %1023 = vst.msk [vmem:[%s1443_s25 + $0x180] sm:$0xff] %vm974_vm1, %v958_v20  ;;  %994 = vst.msk [vmem:[%s1443_s25 + $0x98] sm:$0xff] %vm974_vm1, %v929_v21  ;;  %v961_v23 = vsel %vm833_vm9, %v1265_v13, %v897_v17  ;;  %vm831_vm11 = vcmp.ge.f32.partialorder %v722_v19, 0.0  ;;  %v895_v24 = vmul.f32 0.2, %v722_v19 }
 0x10d   : > { %1026 = vst.msk [vmem:[%s1443_s25 + $0x198] sm:$0xff] %vm974_vm1, %v961_v23  ;;  %v927_v25 = vsel %vm799_vm10, %v594_v18, %v863_v22  ;;  %v1236_v26 = vpop.f32.mrb[20].mxu0 }
 0x10e   : > { %v1268_v27 = vpop.f32.mrb[20].mxu1  ;;  %992 = vst.msk [vmem:[%s1443_s25 + $0x88] sm:$0xff] %vm974_vm1, %v927_v25  ;;  %v959_v28 = vsel %vm831_vm11, %v722_v19, %v895_v24  ;;  %vm804_vm12 = vcmp.ge.f32.partialorder %v1236_v26, 0.0  ;;  %v868_v29 = vmul.f32 0.2, %v1236_v26  ;;  %v607_v30 = vpop.f32.mrb[21].mxu0 }
 0x10f   : > { %vm836_vm13 = vcmp.ge.f32.partialorder %v1268_v27, 0.0  ;;  %v735_v31 = vpop.f32.mrb[21].mxu1  ;;  %1024 = vst.msk [vmem:[%s1443_s25 + $0x188] sm:$0xff] %vm974_vm1, %v959_v28  ;;  %v900_v32 = vmul.f32 0.2, %v1268_v27  ;;  %vm802_vm14 = vcmp.ge.f32.partialorder %v607_v30, 0.0 }
 0x110   : > { %v866_v33 = vmul.f32 0.2, %v607_v30  ;;  %vm834_vm15 = vcmp.ge.f32.partialorder %v735_v31, 0.0  ;;  %v932_v34 = vsel %vm804_vm12, %v1236_v26, %v868_v29  ;;  %v898_v35 = vmul.f32 0.2, %v735_v31  ;;  %v1237_v36 = vpop.f32.mrb[22].mxu0 }
 0x111   : > { %v1269_v37 = vpop.f32.mrb[22].mxu1  ;;  %997 = vst.msk [vmem:[%s1443_s25 + $0xb0] sm:$0xff] %vm974_vm1, %v932_v34  ;;  %v964_v38 = vsel %vm836_vm13, %v1268_v27, %v900_v32  ;;  %vm805_vm0 = vcmp.ge.f32.partialorder %v1237_v36, 0.0  ;;  %v869_v40 = vmul.f32 0.2, %v1237_v36  ;;  %v610_v41 = vpop.f32.mrb[23].mxu0 }
 0x112   : > { %v930_v39 = vsel %vm802_vm14, %v607_v30, %v866_v33  ;;  %v738_v42 = vpop.f32.mrb[23].mxu1  ;;  %1029 = vst.msk [vmem:[%s1443_s25 + $0x1b0] sm:$0xff] %vm974_vm1, %v964_v38  ;;  %v962_v43 = vsel %vm834_vm15, %v735_v31, %v898_v35  ;;  %vm837_vm2 = vcmp.ge.f32.partialorder %v1269_v37, 0.0  ;;  %v901_v44 = vmul.f32 0.2, %v1269_v37 }
 0x113   : > { %995 = vst.msk [vmem:[%s1443_s25 + $0xa0] sm:$0xff] %vm974_vm1, %v930_v39  ;;  %vm803_vm3 = vcmp.ge.f32.partialorder %v610_v41, 0.0  ;;  %1027 = vst.msk [vmem:[%s1443_s25 + $0x1a0] sm:$0xff] %vm974_vm1, %v962_v43  ;;  %v933_v45 = vsel %vm805_vm0, %v1237_v36, %v869_v40  ;;  %v867_v46 = vmul.f32 0.2, %v610_v41  ;;  %vm835_vm4 = vcmp.ge.f32.partialorder %v738_v42, 0.0 }
 0x114   : > { %v899_v47 = vmul.f32 0.2, %v738_v42  ;;  %998 = vst.msk [vmem:[%s1443_s25 + $0xb8] sm:$0xff] %vm974_vm1, %v933_v45  ;;  %v965_v48 = vsel %vm837_vm2, %v1269_v37, %v901_v44 }
 0x115   : > { %1030 = vst.msk [vmem:[%s1443_s25 + $0x1b8] sm:$0xff] %vm974_vm1, %v965_v48  ;;  %v931_v49 = vsel %vm803_vm3, %v610_v41, %v867_v46  ;;  %v1240_v51 = vpop.f32.mrb[24].mxu0 }
 0x116   : > { %v963_v50 = vsel %vm835_vm4, %v738_v42, %v899_v47  ;;  %v1272_v52 = vpop.f32.mrb[24].mxu1  ;;  %996 = vst.msk [vmem:[%s1443_s25 + $0xa8] sm:$0xff] %vm974_vm1, %v931_v49  ;;  %vm808_vm5 = vcmp.ge.f32.partialorder %v1240_v51, 0.0  ;;  %v872_v53 = vmul.f32 0.2, %v1240_v51  ;;  %v623_v55 = vpop.f32.mrb[25].mxu0 }
 0x117   : > { %1028 = vst.msk [vmem:[%s1443_s25 + $0x1a8] sm:$0xff] %vm974_vm1, %v963_v50  ;;  %vm840_vm6 = vcmp.ge.f32.partialorder %v1272_v52, 0.0  ;;  %v904_v54 = vmul.f32 0.2, %v1272_v52  ;;  %v751_v56 = vpop.f32.mrb[25].mxu1  ;;  %vm806_vm7 = vcmp.ge.f32.partialorder %v623_v55, 0.0 }
 0x118   : > { %v936_v57 = vsel %vm808_vm5, %v1240_v51, %v872_v53  ;;  %v870_v59 = vmul.f32 0.2, %v623_v55  ;;  %v1241_v60 = vpop.f32.mrb[26].mxu0  ;;  %v1273_v61 = vpop.f32.mrb[26].mxu1  ;;  %vm838_vm8 = vcmp.ge.f32.partialorder %v751_v56, 0.0 }
 0x119   : > { %v968_v58 = vsel %vm840_vm6, %v1272_v52, %v904_v54  ;;  %1001 = vst.msk [vmem:[%s1443_s25 + $0xd0] sm:$0xff] %vm974_vm1, %v936_v57  ;;  %v902_v62 = vmul.f32 0.2, %v751_v56  ;;  %vm809_vm9 = vcmp.ge.f32.partialorder %v1241_v60, 0.0  ;;  %v873_v63 = vmul.f32 0.2, %v1241_v60 }
 0x11a   : > { %1033 = vst.msk [vmem:[%s1443_s25 + $0x1d0] sm:$0xff] %vm974_vm1, %v968_v58  ;;  %v934_v0 = vsel %vm806_vm7, %v623_v55, %v870_v59  ;;  %vm841_vm10 = vcmp.ge.f32.partialorder %v1273_v61, 0.0  ;;  %v905_v1 = vmul.f32 0.2, %v1273_v61  ;;  %v626_v2 = vpop.f32.mrb[27].mxu0  ;;  %v754_v3 = vpop.f32.mrb[27].mxu1 }
 0x11b   : > { %999 = vst.msk [vmem:[%s1443_s25 + $0xc0] sm:$0xff] %vm974_vm1, %v934_v0  ;;  %v966_v4 = vsel %vm838_vm8, %v751_v56, %v902_v62  ;;  %v937_v5 = vsel %vm809_vm9, %v1241_v60, %v873_v63  ;;  %vm807_vm11 = vcmp.ge.f32.partialorder %v626_v2, 0.0  ;;  %v871_v6 = vmul.f32 0.2, %v626_v2 }
 0x11c   : > { %1031 = vst.msk [vmem:[%s1443_s25 + $0x1c0] sm:$0xff] %vm974_vm1, %v966_v4  ;;  %1002 = vst.msk [vmem:[%s1443_s25 + $0xd8] sm:$0xff] %vm974_vm1, %v937_v5  ;;  %v969_v7 = vsel %vm841_vm10, %v1273_v61, %v905_v1  ;;  %vm839_vm12 = vcmp.ge.f32.partialorder %v754_v3, 0.0  ;;  %v903_v8 = vmul.f32 0.2, %v754_v3 }
 0x11d   : > { %1034 = vst.msk [vmem:[%s1443_s25 + $0x1d8] sm:$0xff] %vm974_vm1, %v969_v7  ;;  %v935_v9 = vsel %vm807_vm11, %v626_v2, %v871_v6  ;;  %v1244_v10 = vpop.f32.mrb[28].mxu0 }
 0x11e   : > { %v1276_v11 = vpop.f32.mrb[28].mxu1  ;;  %1000 = vst.msk [vmem:[%s1443_s25 + $0xc8] sm:$0xff] %vm974_vm1, %v935_v9  ;;  %v967_v12 = vsel %vm839_vm12, %v754_v3, %v903_v8  ;;  %vm812_vm13 = vcmp.ge.f32.partialorder %v1244_v10, 0.0  ;;  %v876_v13 = vmul.f32 0.2, %v1244_v10  ;;  %v639_v14 = vpop.f32.mrb[29].mxu0 }
 0x11f   : > { %vm844_vm14 = vcmp.ge.f32.partialorder %v1276_v11, 0.0  ;;  %v767_v15 = vpop.f32.mrb[29].mxu1  ;;  %1032 = vst.msk [vmem:[%s1443_s25 + $0x1c8] sm:$0xff] %vm974_vm1, %v967_v12  ;;  %v908_v16 = vmul.f32 0.2, %v1276_v11  ;;  %vm810_vm15 = vcmp.ge.f32.partialorder %v639_v14, 0.0 }
 0x120   : > { %v874_v17 = vmul.f32 0.2, %v639_v14  ;;  %vm842_vm0 = vcmp.ge.f32.partialorder %v767_v15, 0.0  ;;  %v940_v18 = vsel %vm812_vm13, %v1244_v10, %v876_v13  ;;  %v906_v19 = vmul.f32 0.2, %v767_v15  ;;  %v1245_v20 = vpop.f32.mrb[30].mxu0 }
 0x121   : > { %v1277_v21 = vpop.f32.mrb[30].mxu1  ;;  %1005 = vst.msk [vmem:[%s1443_s25 + $0xf0] sm:$0xff] %vm974_vm1, %v940_v18  ;;  %v972_v22 = vsel %vm844_vm14, %v1276_v11, %v908_v16  ;;  %vm813_vm2 = vcmp.ge.f32.partialorder %v1245_v20, 0.0  ;;  %v877_v24 = vmul.f32 0.2, %v1245_v20  ;;  %v642_v25 = vpop.f32.mrb[31].mxu0 }
 0x122   : > { %v938_v23 = vsel %vm810_vm15, %v639_v14, %v874_v17  ;;  %v770_v26 = vpop.f32.mrb[31].mxu1  ;;  %1037 = vst.msk [vmem:[%s1443_s25 + $0x1f0] sm:$0xff] %vm974_vm1, %v972_v22  ;;  %v970_v27 = vsel %vm842_vm0, %v767_v15, %v906_v19  ;;  %vm845_vm3 = vcmp.ge.f32.partialorder %v1277_v21, 0.0  ;;  %v909_v28 = vmul.f32 0.2, %v1277_v21 }
 0x123   : > { %1003 = vst.msk [vmem:[%s1443_s25 + $0xe0] sm:$0xff] %vm974_vm1, %v938_v23  ;;  %vm811_vm4 = vcmp.ge.f32.partialorder %v642_v25, 0.0  ;;  %1035 = vst.msk [vmem:[%s1443_s25 + $0x1e0] sm:$0xff] %vm974_vm1, %v970_v27  ;;  %v941_v29 = vsel %vm813_vm2, %v1245_v20, %v877_v24  ;;  %v875_v30 = vmul.f32 0.2, %v642_v25  ;;  %vm843_vm5 = vcmp.ge.f32.partialorder %v770_v26, 0.0 }
 0x124   : > { %v907_v31 = vmul.f32 0.2, %v770_v26  ;;  %1006 = vst.msk [vmem:[%s1443_s25 + $0xf8] sm:$0xff] %vm974_vm1, %v941_v29  ;;  %v973_v32 = vsel %vm845_vm3, %v1277_v21, %v909_v28 }
 0x125   : > { %1038 = vst.msk [vmem:[%s1443_s25 + $0x1f8] sm:$0xff] %vm974_vm1, %v973_v32  ;;  %v939_v33 = vsel %vm811_vm4, %v642_v25, %v875_v30 }
 0x126   : > { %v971_v34 = vsel %vm843_vm5, %v770_v26, %v907_v31  ;;  %1004 = vst.msk [vmem:[%s1443_s25 + $0xe8] sm:$0xff] %vm974_vm1, %v939_v33 }
 0x127   : > { %1036 = vst.msk [vmem:[%s1443_s25 + $0x1e8] sm:$0xff] %vm974_vm1, %v971_v34 }
 0x128 PF: > { %s12_s9 = sadd.s32 1, %s1333_s9  }
 0x129   : > { %p9_p4 = scmp.ge.s32.totalorder %s12_s9, 6  }
 0x12b   :  { %11 = sbr.rel (!%p9_p4) target bundleno = 1 (0x1), region = 58 }

// kernel: discriminator_forward.5
= control target key start
LH: loop header
LB: loop body
LE: loop exit
PB: predicated region body
PF: predicated region fallthrough
CT: control target
= control target key end

     0   :  { %vm813_vm0 = vcmask 130048   ;;  %s1489_s1 = inlined_call_operand.vmem [shape: bf16[128,16], index: 1, kind: input, shape index: {}]   ;;  %s1490_s0 = inlined_call_operand.vmem [shape: bf16[512,128], index: 0, kind: input, shape index: {}]   ;;  %s1491_s2 = inlined_call_operand.vmem [shape: f32[512,16], index: 2, kind: output, shape index: {}]  }
   0x1   :  { %v1058_v0 = vld [vmem:[%s1489_s1] sm:$0xff]   ;;  %v1059_v1 = vld [vmem:[%s1489_s1 + $0x8] sm:$0xff]   ;;  %v1060_v2 = vld [vmem:[%s1489_s1 + $0x10] sm:$0xff]  }
   0x2   :  { %962 = vmatprep.subr.bf16.mxu0 %v1058_v0  ;;  %1042 = vmatprep.subr.bf16.mxu1 %v1058_v0  ;;  %v1061_v3 = vld [vmem:[%s1489_s1 + $0x18] sm:$0xff]   ;;  %v1066_v4 = vld [vmem:[%s1490_s0] sm:$0xff]   ;;  %v1063_v7 = vld [vmem:[%s1489_s1 + $0x28] sm:$0xff]  }
   0x3   :  { %963 = vmatpush3.bf16.msra.mxu0 %v1058_v0  ;;  %1050 = vmatpush3.bf16.msra.mxu1 %v1058_v0  ;;  %v1067_v5 = vld [vmem:[%s1490_s0 + $0x80] sm:$0xff]   ;;  %v1064_v8 = vld [vmem:[%s1489_s1 + $0x30] sm:$0xff]   ;;  %v1065_v9 = vld [vmem:[%s1489_s1 + $0x38] sm:$0xff]  }
   0x4   :  { %964 = vmatprep.subr.bf16.mxu0 %v1059_v1  ;;  %1043 = vmatprep.subr.bf16.mxu1 %v1059_v1  ;;  %v1062_v6 = vld [vmem:[%s1489_s1 + $0x20] sm:$0xff]   ;;  %v1068_v10 = vld [vmem:[%s1490_s0 + $0x8] sm:$0xff]   ;;  %v1070_v12 = vld [vmem:[%s1490_s0 + $0x10] sm:$0xff]  }
   0x5   :  { %978 = vmatprep.mubr.bf16.mxu0 %v1066_v4  ;;  %1010 = vmatprep.mubr.bf16.mxu1 %v1067_v5  ;;  %v1069_v11 = vld [vmem:[%s1490_s0 + $0x88] sm:$0xff]   ;;  %v1071_v13 = vld [vmem:[%s1490_s0 + $0x90] sm:$0xff]   ;;  %v1072_v14 = vld [vmem:[%s1490_s0 + $0x18] sm:$0xff]  }
   0x6   :  { %v1073_v15 = vld [vmem:[%s1490_s0 + $0x98] sm:$0xff]   ;;  %v1074_v16 = vld [vmem:[%s1490_s0 + $0x20] sm:$0xff]   ;;  %v1076_v18 = vld [vmem:[%s1490_s0 + $0x28] sm:$0xff]  }
   0x7   :  { %965 = vmatpush3.bf16.msra.mxu0 %v1059_v1  ;;  %1051 = vmatpush3.bf16.msra.mxu1 %v1059_v1  ;;  %v1075_v17 = vld [vmem:[%s1490_s0 + $0xa0] sm:$0xff]   ;;  %v1077_v19 = vld [vmem:[%s1490_s0 + $0xa8] sm:$0xff]   ;;  %v1078_v20 = vld [vmem:[%s1490_s0 + $0x30] sm:$0xff]  }
   0x8   :  { %966 = vmatprep.subr.bf16.mxu0 %v1060_v2  ;;  %1044 = vmatprep.subr.bf16.mxu1 %v1060_v2  ;;  %v1079_v21 = vld [vmem:[%s1490_s0 + $0xb0] sm:$0xff]   ;;  %v1080_v22 = vld [vmem:[%s1490_s0 + $0x38] sm:$0xff]   ;;  %v1082_v24 = vld [vmem:[%s1490_s0 + $0x40] sm:$0xff]  }
   0x9   :  { %v1081_v23 = vld [vmem:[%s1490_s0 + $0xb8] sm:$0xff]   ;;  %v1083_v25 = vld [vmem:[%s1490_s0 + $0xc0] sm:$0xff]   ;;  %v1084_v26 = vld [vmem:[%s1490_s0 + $0x48] sm:$0xff]  }
   0xa   :  { %v1085_v27 = vld [vmem:[%s1490_s0 + $0xc8] sm:$0xff]   ;;  %v1086_v28 = vld [vmem:[%s1490_s0 + $0x50] sm:$0xff]   ;;  %v1088_v30 = vld [vmem:[%s1490_s0 + $0x58] sm:$0xff]  }
   0xb   :  { %967 = vmatpush3.bf16.msra.mxu0 %v1060_v2  ;;  %1052 = vmatpush3.bf16.msra.mxu1 %v1060_v2  ;;  %v1087_v29 = vld [vmem:[%s1490_s0 + $0xd0] sm:$0xff]   ;;  %v1089_v31 = vld [vmem:[%s1490_s0 + $0xd8] sm:$0xff]   ;;  %v1090_v32 = vld [vmem:[%s1490_s0 + $0x60] sm:$0xff]  }
   0xc   :  { %968 = vmatprep.subr.bf16.mxu0 %v1061_v3  ;;  %1045 = vmatprep.subr.bf16.mxu1 %v1061_v3  ;;  %v1091_v33 = vld [vmem:[%s1490_s0 + $0xe0] sm:$0xff]   ;;  %v1092_v34 = vld [vmem:[%s1490_s0 + $0x68] sm:$0xff]   ;;  %v1094_v36 = vld [vmem:[%s1490_s0 + $0x70] sm:$0xff]  }
   0xd   :  { %v1093_v35 = vld [vmem:[%s1490_s0 + $0xe8] sm:$0xff]   ;;  %v1095_v37 = vld [vmem:[%s1490_s0 + $0xf0] sm:$0xff]   ;;  %v1096_v38 = vld [vmem:[%s1490_s0 + $0x78] sm:$0xff]  }
   0xe   :  { %v1097_v39 = vld [vmem:[%s1490_s0 + $0xf8] sm:$0xff]  }
   0xf   :  { %969 = vmatpush3.bf16.msra.mxu0 %v1061_v3  ;;  %1053 = vmatpush3.bf16.msra.mxu1 %v1061_v3 }
  0x10   :  { %970 = vmatprep.subr.bf16.mxu0 %v1062_v6  ;;  %1046 = vmatprep.subr.bf16.mxu1 %v1062_v6 }
  0x13   :  { %971 = vmatpush3.bf16.msra.mxu0 %v1062_v6  ;;  %1054 = vmatpush3.bf16.msra.mxu1 %v1062_v6 }
  0x14   :  { %972 = vmatprep.subr.bf16.mxu0 %v1063_v7  ;;  %1047 = vmatprep.subr.bf16.mxu1 %v1063_v7 }
  0x17   :  { %973 = vmatpush3.bf16.msra.mxu0 %v1063_v7  ;;  %1055 = vmatpush3.bf16.msra.mxu1 %v1063_v7 }
  0x18   :  { %974 = vmatprep.subr.bf16.mxu0 %v1064_v8  ;;  %1048 = vmatprep.subr.bf16.mxu1 %v1064_v8 }
  0x1b   :  { %975 = vmatpush3.bf16.msra.mxu0 %v1064_v8  ;;  %1056 = vmatpush3.bf16.msra.mxu1 %v1064_v8 }
  0x1c   :  { %976 = vmatprep.subr.bf16.mxu0 %v1065_v9  ;;  %1049 = vmatprep.subr.bf16.mxu1 %v1065_v9 }
  0x1f   :  { %977 = vmatpush3.bf16.msra.mxu0 %v1065_v9  ;;  %1057 = vmatpush3.bf16.msra.mxu1 %v1065_v9 }
  0x22   :  { %979 = vmatmul.mubr.bf16.vlgmr.msra.gmra.mrb[0].mxu0 %v1068_v10  ;;  %1011 = vmatmul.mubr.bf16.vlgmr.msra.gmra.mrb[0].mxu1 %v1069_v11 }
  0x23   :  { %982 = vmatprep.mubr.bf16.mxu0 %v1070_v12  ;;  %1014 = vmatprep.mubr.bf16.mxu1 %v1071_v13 }
  0x2a   :  { %983 = vmatmul.mubr.bf16.gmra.mrb[4].mxu0 %v1072_v14  ;;  %1015 = vmatmul.mubr.bf16.gmra.mrb[4].mxu1 %v1073_v15 }
  0x2b   :  { %986 = vmatprep.mubr.bf16.mxu0 %v1074_v16  ;;  %1018 = vmatprep.mubr.bf16.mxu1 %v1075_v17 }
  0x32   :  { %987 = vmatmul.mubr.bf16.gmra.mrb[8].mxu0 %v1076_v18  ;;  %1019 = vmatmul.mubr.bf16.gmra.mrb[8].mxu1 %v1077_v19 }
  0x33   :  { %990 = vmatprep.mubr.bf16.mxu0 %v1078_v20  ;;  %1022 = vmatprep.mubr.bf16.mxu1 %v1079_v21 }
  0x3a   :  { %991 = vmatmul.mubr.bf16.gmra.mrb[12].mxu0 %v1080_v22  ;;  %1023 = vmatmul.mubr.bf16.gmra.mrb[12].mxu1 %v1081_v23 }
  0x3b   :  { %994 = vmatprep.mubr.bf16.mxu0 %v1082_v24  ;;  %1026 = vmatprep.mubr.bf16.mxu1 %v1083_v25 }
  0x42   :  { %995 = vmatmul.mubr.bf16.gmra.mrb[16].mxu0 %v1084_v26  ;;  %1027 = vmatmul.mubr.bf16.gmra.mrb[16].mxu1 %v1085_v27 }
  0x43   :  { %998 = vmatprep.mubr.bf16.mxu0 %v1086_v28  ;;  %1030 = vmatprep.mubr.bf16.mxu1 %v1087_v29 }
  0x4a   :  { %999 = vmatmul.mubr.bf16.gmra.mrb[20].mxu0 %v1088_v30  ;;  %1031 = vmatmul.mubr.bf16.gmra.mrb[20].mxu1 %v1089_v31 }
  0x4b   :  { %1002 = vmatprep.mubr.bf16.mxu0 %v1090_v32  ;;  %1034 = vmatprep.mubr.bf16.mxu1 %v1091_v33 }
  0x52   :  { %1003 = vmatmul.mubr.bf16.gmra.mrb[24].mxu0 %v1092_v34  ;;  %1035 = vmatmul.mubr.bf16.gmra.mrb[24].mxu1 %v1093_v35 }
  0x53   :  { %1006 = vmatprep.mubr.bf16.mxu0 %v1094_v36  ;;  %1038 = vmatprep.mubr.bf16.mxu1 %v1095_v37 }
  0x5a   :  { %1007 = vmatmul.mubr.bf16.gmra.mrb[28].mxu0 %v1096_v38  ;;  %1039 = vmatmul.mubr.bf16.gmra.mrb[28].mxu1 %v1097_v39 }
  0xf5   :  { %v980_v40 = vpop.f32.mrb[0].mxu0  ;;  %v1012_v41 = vpop.f32.mrb[0].mxu1 }
  0xf6   :  { %vm623_vm1 = vcmp.ge.f32.partialorder %v980_v40, 0.0  ;;  %v687_v42 = vmul.f32 0.2, %v980_v40  ;;  %vm655_vm2 = vcmp.ge.f32.partialorder %v1012_v41, 0.0  ;;  %v719_v43 = vmul.f32 0.2, %v1012_v41 }
  0xf7   :  { %v366_v44 = vpop.f32.mrb[1].mxu0  ;;  %v494_v45 = vpop.f32.mrb[1].mxu1 }
  0xf8   :  { %v751_v46 = vsel %vm623_vm1, %v980_v40, %v687_v42  ;;  %v783_v47 = vsel %vm655_vm2, %v1012_v41, %v719_v43  ;;  %vm621_vm3 = vcmp.ge.f32.partialorder %v366_v44, 0.0  ;;  %v685_v48 = vmul.f32 0.2, %v366_v44  ;;  %v981_v49 = vpop.f32.mrb[2].mxu0  ;;  %v1013_v50 = vpop.f32.mrb[2].mxu1 }
  0xf9   :  { %816 = vst.msk [vmem:[%s1491_s2 + $0x10] sm:$0xff] %vm813_vm0, %v751_v46  ;;  %848 = vst.msk [vmem:[%s1491_s2 + $0x110] sm:$0xff] %vm813_vm0, %v783_v47  ;;  %vm653_vm4 = vcmp.ge.f32.partialorder %v494_v45, 0.0  ;;  %v717_v51 = vmul.f32 0.2, %v494_v45  ;;  %vm624_vm5 = vcmp.ge.f32.partialorder %v981_v49, 0.0 }
  0xfa   :  { %v688_v52 = vmul.f32 0.2, %v981_v49  ;;  %v749_v53 = vsel %vm621_vm3, %v366_v44, %v685_v48  ;;  %vm656_vm6 = vcmp.ge.f32.partialorder %v1013_v50, 0.0  ;;  %v720_v54 = vmul.f32 0.2, %v1013_v50  ;;  %v369_v55 = vpop.f32.mrb[3].mxu0 }
  0xfb   :  { %v497_v56 = vpop.f32.mrb[3].mxu1  ;;  %814 = vst.msk [vmem:[%s1491_s2] sm:$0xff] %vm813_vm0, %v749_v53  ;;  %v781_v57 = vsel %vm653_vm4, %v494_v45, %v717_v51  ;;  %vm622_vm7 = vcmp.ge.f32.partialorder %v369_v55, 0.0  ;;  %v686_v59 = vmul.f32 0.2, %v369_v55 }
  0xfc   :  { %v752_v58 = vsel %vm624_vm5, %v981_v49, %v688_v52  ;;  %846 = vst.msk [vmem:[%s1491_s2 + $0x100] sm:$0xff] %vm813_vm0, %v781_v57  ;;  %v784_v60 = vsel %vm656_vm6, %v1013_v50, %v720_v54  ;;  %vm654_vm8 = vcmp.ge.f32.partialorder %v497_v56, 0.0  ;;  %v718_v61 = vmul.f32 0.2, %v497_v56 }
  0xfd   :  { %817 = vst.msk [vmem:[%s1491_s2 + $0x18] sm:$0xff] %vm813_vm0, %v752_v58  ;;  %849 = vst.msk [vmem:[%s1491_s2 + $0x118] sm:$0xff] %vm813_vm0, %v784_v60  ;;  %v750_v62 = vsel %vm622_vm7, %v369_v55, %v686_v59  ;;  %v984_v63 = vpop.f32.mrb[4].mxu0  ;;  %v1016_v0 = vpop.f32.mrb[4].mxu1 }
  0xfe   :  { %815 = vst.msk [vmem:[%s1491_s2 + $0x8] sm:$0xff] %vm813_vm0, %v750_v62  ;;  %v782_v1 = vsel %vm654_vm8, %v497_v56, %v718_v61  ;;  %vm627_vm9 = vcmp.ge.f32.partialorder %v984_v63, 0.0  ;;  %v691_v2 = vmul.f32 0.2, %v984_v63  ;;  %vm659_vm10 = vcmp.ge.f32.partialorder %v1016_v0, 0.0  ;;  %v382_v3 = vpop.f32.mrb[5].mxu0 }
  0xff   :  { %v510_v4 = vpop.f32.mrb[5].mxu1  ;;  %847 = vst.msk [vmem:[%s1491_s2 + $0x108] sm:$0xff] %vm813_vm0, %v782_v1  ;;  %v723_v5 = vmul.f32 0.2, %v1016_v0  ;;  %vm625_vm11 = vcmp.ge.f32.partialorder %v382_v3, 0.0  ;;  %v985_v9 = vpop.f32.mrb[6].mxu0 }
 0x100   :  { %v689_v6 = vmul.f32 0.2, %v382_v3  ;;  %vm657_vm12 = vcmp.ge.f32.partialorder %v510_v4, 0.0  ;;  %v755_v7 = vsel %vm627_vm9, %v984_v63, %v691_v2  ;;  %v721_v8 = vmul.f32 0.2, %v510_v4  ;;  %v1017_v10 = vpop.f32.mrb[6].mxu1 }
 0x101   :  { %820 = vst.msk [vmem:[%s1491_s2 + $0x30] sm:$0xff] %vm813_vm0, %v755_v7  ;;  %v787_v11 = vsel %vm659_vm10, %v1016_v0, %v723_v5  ;;  %vm628_vm13 = vcmp.ge.f32.partialorder %v985_v9, 0.0  ;;  %v692_v13 = vmul.f32 0.2, %v985_v9  ;;  %v385_v14 = vpop.f32.mrb[7].mxu0  ;;  %v513_v15 = vpop.f32.mrb[7].mxu1 }
 0x102   :  { %v753_v12 = vsel %vm625_vm11, %v382_v3, %v689_v6  ;;  %852 = vst.msk [vmem:[%s1491_s2 + $0x130] sm:$0xff] %vm813_vm0, %v787_v11  ;;  %v785_v16 = vsel %vm657_vm12, %v510_v4, %v721_v8  ;;  %vm660_vm14 = vcmp.ge.f32.partialorder %v1017_v10, 0.0  ;;  %v724_v17 = vmul.f32 0.2, %v1017_v10 }
 0x103   :  { %818 = vst.msk [vmem:[%s1491_s2 + $0x20] sm:$0xff] %vm813_vm0, %v753_v12  ;;  %vm626_vm15 = vcmp.ge.f32.partialorder %v385_v14, 0.0  ;;  %850 = vst.msk [vmem:[%s1491_s2 + $0x120] sm:$0xff] %vm813_vm0, %v785_v16  ;;  %v756_v18 = vsel %vm628_vm13, %v985_v9, %v692_v13  ;;  %v690_v19 = vmul.f32 0.2, %v385_v14  ;;  %vm658_vm1 = vcmp.ge.f32.partialorder %v513_v15, 0.0 }
 0x104   :  { %v722_v20 = vmul.f32 0.2, %v513_v15  ;;  %821 = vst.msk [vmem:[%s1491_s2 + $0x38] sm:$0xff] %vm813_vm0, %v756_v18  ;;  %v788_v21 = vsel %vm660_vm14, %v1017_v10, %v724_v17 }
 0x105   :  { %853 = vst.msk [vmem:[%s1491_s2 + $0x138] sm:$0xff] %vm813_vm0, %v788_v21  ;;  %v754_v22 = vsel %vm626_vm15, %v385_v14, %v690_v19  ;;  %v988_v24 = vpop.f32.mrb[8].mxu0  ;;  %v1020_v25 = vpop.f32.mrb[8].mxu1 }
 0x106   :  { %v786_v23 = vsel %vm658_vm1, %v513_v15, %v722_v20  ;;  %819 = vst.msk [vmem:[%s1491_s2 + $0x28] sm:$0xff] %vm813_vm0, %v754_v22  ;;  %vm631_vm2 = vcmp.ge.f32.partialorder %v988_v24, 0.0  ;;  %v695_v26 = vmul.f32 0.2, %v988_v24  ;;  %vm663_vm3 = vcmp.ge.f32.partialorder %v1020_v25, 0.0  ;;  %v398_v28 = vpop.f32.mrb[9].mxu0 }
 0x107   :  { %851 = vst.msk [vmem:[%s1491_s2 + $0x128] sm:$0xff] %vm813_vm0, %v786_v23  ;;  %v727_v27 = vmul.f32 0.2, %v1020_v25  ;;  %v526_v29 = vpop.f32.mrb[9].mxu1  ;;  %vm629_vm4 = vcmp.ge.f32.partialorder %v398_v28, 0.0  ;;  %v989_v33 = vpop.f32.mrb[10].mxu0 }
 0x108   :  { %v759_v30 = vsel %vm631_vm2, %v988_v24, %v695_v26  ;;  %v693_v32 = vmul.f32 0.2, %v398_v28  ;;  %v1021_v34 = vpop.f32.mrb[10].mxu1  ;;  %vm661_vm5 = vcmp.ge.f32.partialorder %v526_v29, 0.0  ;;  %v725_v35 = vmul.f32 0.2, %v526_v29 }
 0x109   :  { %v791_v31 = vsel %vm663_vm3, %v1020_v25, %v727_v27  ;;  %824 = vst.msk [vmem:[%s1491_s2 + $0x50] sm:$0xff] %vm813_vm0, %v759_v30  ;;  %vm632_vm6 = vcmp.ge.f32.partialorder %v989_v33, 0.0  ;;  %v696_v36 = vmul.f32 0.2, %v989_v33  ;;  %vm664_vm7 = vcmp.ge.f32.partialorder %v1021_v34, 0.0  ;;  %v401_v39 = vpop.f32.mrb[11].mxu0 }
 0x10a   :  { %856 = vst.msk [vmem:[%s1491_s2 + $0x150] sm:$0xff] %vm813_vm0, %v791_v31  ;;  %v757_v37 = vsel %vm629_vm4, %v398_v28, %v693_v32  ;;  %v728_v38 = vmul.f32 0.2, %v1021_v34  ;;  %v529_v40 = vpop.f32.mrb[11].mxu1  ;;  %v789_v41 = vsel %vm661_vm5, %v526_v29, %v725_v35  ;;  %vm630_vm8 = vcmp.ge.f32.partialorder %v401_v39, 0.0 }
 0x10b   :  { %822 = vst.msk [vmem:[%s1491_s2 + $0x40] sm:$0xff] %vm813_vm0, %v757_v37  ;;  %v760_v42 = vsel %vm632_vm6, %v989_v33, %v696_v36  ;;  %v694_v43 = vmul.f32 0.2, %v401_v39  ;;  %854 = vst.msk [vmem:[%s1491_s2 + $0x140] sm:$0xff] %vm813_vm0, %v789_v41  ;;  %vm662_vm9 = vcmp.ge.f32.partialorder %v529_v40, 0.0 }
 0x10c   :  { %825 = vst.msk [vmem:[%s1491_s2 + $0x58] sm:$0xff] %vm813_vm0, %v760_v42  ;;  %v792_v44 = vsel %vm664_vm7, %v1021_v34, %v728_v38  ;;  %v726_v45 = vmul.f32 0.2, %v529_v40 }
 0x10d   :  { %857 = vst.msk [vmem:[%s1491_s2 + $0x158] sm:$0xff] %vm813_vm0, %v792_v44  ;;  %v758_v46 = vsel %vm630_vm8, %v401_v39, %v694_v43  ;;  %v992_v47 = vpop.f32.mrb[12].mxu0  ;;  %v1024_v48 = vpop.f32.mrb[12].mxu1 }
 0x10e   :  { %823 = vst.msk [vmem:[%s1491_s2 + $0x48] sm:$0xff] %vm813_vm0, %v758_v46  ;;  %v790_v49 = vsel %vm662_vm9, %v529_v40, %v726_v45  ;;  %vm635_vm10 = vcmp.ge.f32.partialorder %v992_v47, 0.0  ;;  %v699_v50 = vmul.f32 0.2, %v992_v47  ;;  %vm667_vm11 = vcmp.ge.f32.partialorder %v1024_v48, 0.0  ;;  %v414_v51 = vpop.f32.mrb[13].mxu0 }
 0x10f   :  { %v542_v52 = vpop.f32.mrb[13].mxu1  ;;  %855 = vst.msk [vmem:[%s1491_s2 + $0x148] sm:$0xff] %vm813_vm0, %v790_v49  ;;  %v731_v53 = vmul.f32 0.2, %v1024_v48  ;;  %vm633_vm12 = vcmp.ge.f32.partialorder %v414_v51, 0.0  ;;  %v993_v57 = vpop.f32.mrb[14].mxu0 }
 0x110   :  { %v697_v54 = vmul.f32 0.2, %v414_v51  ;;  %vm665_vm13 = vcmp.ge.f32.partialorder %v542_v52, 0.0  ;;  %v763_v55 = vsel %vm635_vm10, %v992_v47, %v699_v50  ;;  %v729_v56 = vmul.f32 0.2, %v542_v52  ;;  %v1025_v58 = vpop.f32.mrb[14].mxu1 }
 0x111   :  { %828 = vst.msk [vmem:[%s1491_s2 + $0x70] sm:$0xff] %vm813_vm0, %v763_v55  ;;  %v795_v59 = vsel %vm667_vm11, %v1024_v48, %v731_v53  ;;  %vm636_vm14 = vcmp.ge.f32.partialorder %v993_v57, 0.0  ;;  %v700_v61 = vmul.f32 0.2, %v993_v57  ;;  %v417_v62 = vpop.f32.mrb[15].mxu0  ;;  %v545_v63 = vpop.f32.mrb[15].mxu1 }
 0x112   :  { %v761_v60 = vsel %vm633_vm12, %v414_v51, %v697_v54  ;;  %860 = vst.msk [vmem:[%s1491_s2 + $0x170] sm:$0xff] %vm813_vm0, %v795_v59  ;;  %v793_v0 = vsel %vm665_vm13, %v542_v52, %v729_v56  ;;  %vm668_vm15 = vcmp.ge.f32.partialorder %v1025_v58, 0.0  ;;  %v732_v1 = vmul.f32 0.2, %v1025_v58 }
 0x113   :  { %826 = vst.msk [vmem:[%s1491_s2 + $0x60] sm:$0xff] %vm813_vm0, %v761_v60  ;;  %vm634_vm1 = vcmp.ge.f32.partialorder %v417_v62, 0.0  ;;  %858 = vst.msk [vmem:[%s1491_s2 + $0x160] sm:$0xff] %vm813_vm0, %v793_v0  ;;  %v764_v2 = vsel %vm636_vm14, %v993_v57, %v700_v61  ;;  %v698_v3 = vmul.f32 0.2, %v417_v62  ;;  %vm666_vm2 = vcmp.ge.f32.partialorder %v545_v63, 0.0 }
 0x114   :  { %v730_v4 = vmul.f32 0.2, %v545_v63  ;;  %829 = vst.msk [vmem:[%s1491_s2 + $0x78] sm:$0xff] %vm813_vm0, %v764_v2  ;;  %v796_v5 = vsel %vm668_vm15, %v1025_v58, %v732_v1 }
 0x115   :  { %861 = vst.msk [vmem:[%s1491_s2 + $0x178] sm:$0xff] %vm813_vm0, %v796_v5  ;;  %v762_v6 = vsel %vm634_vm1, %v417_v62, %v698_v3  ;;  %v996_v8 = vpop.f32.mrb[16].mxu0  ;;  %v1028_v9 = vpop.f32.mrb[16].mxu1 }
 0x116   :  { %v794_v7 = vsel %vm666_vm2, %v545_v63, %v730_v4  ;;  %827 = vst.msk [vmem:[%s1491_s2 + $0x68] sm:$0xff] %vm813_vm0, %v762_v6  ;;  %vm639_vm3 = vcmp.ge.f32.partialorder %v996_v8, 0.0  ;;  %v703_v10 = vmul.f32 0.2, %v996_v8  ;;  %vm671_vm4 = vcmp.ge.f32.partialorder %v1028_v9, 0.0  ;;  %v430_v12 = vpop.f32.mrb[17].mxu0 }
 0x117   :  { %859 = vst.msk [vmem:[%s1491_s2 + $0x168] sm:$0xff] %vm813_vm0, %v794_v7  ;;  %v735_v11 = vmul.f32 0.2, %v1028_v9  ;;  %v558_v13 = vpop.f32.mrb[17].mxu1  ;;  %vm637_vm5 = vcmp.ge.f32.partialorder %v430_v12, 0.0  ;;  %v997_v17 = vpop.f32.mrb[18].mxu0 }
 0x118   :  { %v767_v14 = vsel %vm639_vm3, %v996_v8, %v703_v10  ;;  %v701_v16 = vmul.f32 0.2, %v430_v12  ;;  %v1029_v18 = vpop.f32.mrb[18].mxu1  ;;  %vm669_vm6 = vcmp.ge.f32.partialorder %v558_v13, 0.0  ;;  %v733_v19 = vmul.f32 0.2, %v558_v13 }
 0x119   :  { %v799_v15 = vsel %vm671_vm4, %v1028_v9, %v735_v11  ;;  %832 = vst.msk [vmem:[%s1491_s2 + $0x90] sm:$0xff] %vm813_vm0, %v767_v14  ;;  %vm640_vm7 = vcmp.ge.f32.partialorder %v997_v17, 0.0  ;;  %v704_v20 = vmul.f32 0.2, %v997_v17  ;;  %vm672_vm8 = vcmp.ge.f32.partialorder %v1029_v18, 0.0  ;;  %v433_v23 = vpop.f32.mrb[19].mxu0 }
 0x11a   :  { %864 = vst.msk [vmem:[%s1491_s2 + $0x190] sm:$0xff] %vm813_vm0, %v799_v15  ;;  %v765_v21 = vsel %vm637_vm5, %v430_v12, %v701_v16  ;;  %v736_v22 = vmul.f32 0.2, %v1029_v18  ;;  %v561_v24 = vpop.f32.mrb[19].mxu1  ;;  %v797_v25 = vsel %vm669_vm6, %v558_v13, %v733_v19  ;;  %vm638_vm9 = vcmp.ge.f32.partialorder %v433_v23, 0.0 }
 0x11b   :  { %830 = vst.msk [vmem:[%s1491_s2 + $0x80] sm:$0xff] %vm813_vm0, %v765_v21  ;;  %v768_v26 = vsel %vm640_vm7, %v997_v17, %v704_v20  ;;  %v702_v27 = vmul.f32 0.2, %v433_v23  ;;  %862 = vst.msk [vmem:[%s1491_s2 + $0x180] sm:$0xff] %vm813_vm0, %v797_v25  ;;  %vm670_vm10 = vcmp.ge.f32.partialorder %v561_v24, 0.0 }
 0x11c   :  { %833 = vst.msk [vmem:[%s1491_s2 + $0x98] sm:$0xff] %vm813_vm0, %v768_v26  ;;  %v800_v28 = vsel %vm672_vm8, %v1029_v18, %v736_v22  ;;  %v734_v29 = vmul.f32 0.2, %v561_v24 }
 0x11d   :  { %865 = vst.msk [vmem:[%s1491_s2 + $0x198] sm:$0xff] %vm813_vm0, %v800_v28  ;;  %v766_v30 = vsel %vm638_vm9, %v433_v23, %v702_v27  ;;  %v1000_v31 = vpop.f32.mrb[20].mxu0  ;;  %v1032_v32 = vpop.f32.mrb[20].mxu1 }
 0x11e   :  { %831 = vst.msk [vmem:[%s1491_s2 + $0x88] sm:$0xff] %vm813_vm0, %v766_v30  ;;  %v798_v33 = vsel %vm670_vm10, %v561_v24, %v734_v29  ;;  %vm643_vm11 = vcmp.ge.f32.partialorder %v1000_v31, 0.0  ;;  %v707_v34 = vmul.f32 0.2, %v1000_v31  ;;  %vm675_vm12 = vcmp.ge.f32.partialorder %v1032_v32, 0.0  ;;  %v446_v35 = vpop.f32.mrb[21].mxu0 }
 0x11f   :  { %v574_v36 = vpop.f32.mrb[21].mxu1  ;;  %863 = vst.msk [vmem:[%s1491_s2 + $0x188] sm:$0xff] %vm813_vm0, %v798_v33  ;;  %v739_v37 = vmul.f32 0.2, %v1032_v32  ;;  %vm641_vm13 = vcmp.ge.f32.partialorder %v446_v35, 0.0  ;;  %v1001_v41 = vpop.f32.mrb[22].mxu0 }
 0x120   :  { %v705_v38 = vmul.f32 0.2, %v446_v35  ;;  %vm673_vm14 = vcmp.ge.f32.partialorder %v574_v36, 0.0  ;;  %v771_v39 = vsel %vm643_vm11, %v1000_v31, %v707_v34  ;;  %v737_v40 = vmul.f32 0.2, %v574_v36  ;;  %v1033_v42 = vpop.f32.mrb[22].mxu1 }
 0x121   :  { %836 = vst.msk [vmem:[%s1491_s2 + $0xb0] sm:$0xff] %vm813_vm0, %v771_v39  ;;  %v803_v43 = vsel %vm675_vm12, %v1032_v32, %v739_v37  ;;  %vm644_vm15 = vcmp.ge.f32.partialorder %v1001_v41, 0.0  ;;  %v708_v45 = vmul.f32 0.2, %v1001_v41  ;;  %v449_v46 = vpop.f32.mrb[23].mxu0  ;;  %v577_v47 = vpop.f32.mrb[23].mxu1 }
 0x122   :  { %v769_v44 = vsel %vm641_vm13, %v446_v35, %v705_v38  ;;  %868 = vst.msk [vmem:[%s1491_s2 + $0x1b0] sm:$0xff] %vm813_vm0, %v803_v43  ;;  %v801_v48 = vsel %vm673_vm14, %v574_v36, %v737_v40  ;;  %vm676_vm1 = vcmp.ge.f32.partialorder %v1033_v42, 0.0  ;;  %v740_v49 = vmul.f32 0.2, %v1033_v42 }
 0x123   :  { %834 = vst.msk [vmem:[%s1491_s2 + $0xa0] sm:$0xff] %vm813_vm0, %v769_v44  ;;  %vm642_vm2 = vcmp.ge.f32.partialorder %v449_v46, 0.0  ;;  %866 = vst.msk [vmem:[%s1491_s2 + $0x1a0] sm:$0xff] %vm813_vm0, %v801_v48  ;;  %v772_v50 = vsel %vm644_vm15, %v1001_v41, %v708_v45  ;;  %v706_v51 = vmul.f32 0.2, %v449_v46  ;;  %vm674_vm3 = vcmp.ge.f32.partialorder %v577_v47, 0.0 }
 0x124   :  { %v738_v52 = vmul.f32 0.2, %v577_v47  ;;  %837 = vst.msk [vmem:[%s1491_s2 + $0xb8] sm:$0xff] %vm813_vm0, %v772_v50  ;;  %v804_v53 = vsel %vm676_vm1, %v1033_v42, %v740_v49 }
 0x125   :  { %869 = vst.msk [vmem:[%s1491_s2 + $0x1b8] sm:$0xff] %vm813_vm0, %v804_v53  ;;  %v770_v54 = vsel %vm642_vm2, %v449_v46, %v706_v51  ;;  %v1004_v56 = vpop.f32.mrb[24].mxu0  ;;  %v1036_v57 = vpop.f32.mrb[24].mxu1 }
 0x126   :  { %v802_v55 = vsel %vm674_vm3, %v577_v47, %v738_v52  ;;  %835 = vst.msk [vmem:[%s1491_s2 + $0xa8] sm:$0xff] %vm813_vm0, %v770_v54  ;;  %vm647_vm4 = vcmp.ge.f32.partialorder %v1004_v56, 0.0  ;;  %v711_v58 = vmul.f32 0.2, %v1004_v56  ;;  %vm679_vm5 = vcmp.ge.f32.partialorder %v1036_v57, 0.0  ;;  %v462_v60 = vpop.f32.mrb[25].mxu0 }
 0x127   :  { %867 = vst.msk [vmem:[%s1491_s2 + $0x1a8] sm:$0xff] %vm813_vm0, %v802_v55  ;;  %v743_v59 = vmul.f32 0.2, %v1036_v57  ;;  %v590_v61 = vpop.f32.mrb[25].mxu1  ;;  %vm645_vm6 = vcmp.ge.f32.partialorder %v462_v60, 0.0  ;;  %v1005_v1 = vpop.f32.mrb[26].mxu0 }
 0x128   :  { %v775_v62 = vsel %vm647_vm4, %v1004_v56, %v711_v58  ;;  %v709_v0 = vmul.f32 0.2, %v462_v60  ;;  %v1037_v2 = vpop.f32.mrb[26].mxu1  ;;  %vm677_vm7 = vcmp.ge.f32.partialorder %v590_v61, 0.0  ;;  %v741_v3 = vmul.f32 0.2, %v590_v61 }
 0x129   :  { %v807_v63 = vsel %vm679_vm5, %v1036_v57, %v743_v59  ;;  %840 = vst.msk [vmem:[%s1491_s2 + $0xd0] sm:$0xff] %vm813_vm0, %v775_v62  ;;  %vm648_vm8 = vcmp.ge.f32.partialorder %v1005_v1, 0.0  ;;  %v712_v4 = vmul.f32 0.2, %v1005_v1  ;;  %vm680_vm9 = vcmp.ge.f32.partialorder %v1037_v2, 0.0  ;;  %v465_v7 = vpop.f32.mrb[27].mxu0 }
 0x12a   :  { %872 = vst.msk [vmem:[%s1491_s2 + $0x1d0] sm:$0xff] %vm813_vm0, %v807_v63  ;;  %v773_v5 = vsel %vm645_vm6, %v462_v60, %v709_v0  ;;  %v744_v6 = vmul.f32 0.2, %v1037_v2  ;;  %v593_v8 = vpop.f32.mrb[27].mxu1  ;;  %v805_v9 = vsel %vm677_vm7, %v590_v61, %v741_v3  ;;  %vm646_vm10 = vcmp.ge.f32.partialorder %v465_v7, 0.0 }
 0x12b   :  { %838 = vst.msk [vmem:[%s1491_s2 + $0xc0] sm:$0xff] %vm813_vm0, %v773_v5  ;;  %v776_v10 = vsel %vm648_vm8, %v1005_v1, %v712_v4  ;;  %v710_v11 = vmul.f32 0.2, %v465_v7  ;;  %870 = vst.msk [vmem:[%s1491_s2 + $0x1c0] sm:$0xff] %vm813_vm0, %v805_v9  ;;  %vm678_vm11 = vcmp.ge.f32.partialorder %v593_v8, 0.0 }
 0x12c   :  { %841 = vst.msk [vmem:[%s1491_s2 + $0xd8] sm:$0xff] %vm813_vm0, %v776_v10  ;;  %v808_v12 = vsel %vm680_vm9, %v1037_v2, %v744_v6  ;;  %v742_v13 = vmul.f32 0.2, %v593_v8 }
 0x12d   :  { %873 = vst.msk [vmem:[%s1491_s2 + $0x1d8] sm:$0xff] %vm813_vm0, %v808_v12  ;;  %v774_v14 = vsel %vm646_vm10, %v465_v7, %v710_v11  ;;  %v1008_v15 = vpop.f32.mrb[28].mxu0  ;;  %v1040_v16 = vpop.f32.mrb[28].mxu1 }
 0x12e   :  { %839 = vst.msk [vmem:[%s1491_s2 + $0xc8] sm:$0xff] %vm813_vm0, %v774_v14  ;;  %v806_v17 = vsel %vm678_vm11, %v593_v8, %v742_v13  ;;  %vm651_vm12 = vcmp.ge.f32.partialorder %v1008_v15, 0.0  ;;  %v715_v18 = vmul.f32 0.2, %v1008_v15  ;;  %vm683_vm13 = vcmp.ge.f32.partialorder %v1040_v16, 0.0  ;;  %v478_v19 = vpop.f32.mrb[29].mxu0 }
 0x12f   :  { %v606_v20 = vpop.f32.mrb[29].mxu1  ;;  %871 = vst.msk [vmem:[%s1491_s2 + $0x1c8] sm:$0xff] %vm813_vm0, %v806_v17  ;;  %v747_v21 = vmul.f32 0.2, %v1040_v16  ;;  %vm649_vm14 = vcmp.ge.f32.partialorder %v478_v19, 0.0  ;;  %v1009_v25 = vpop.f32.mrb[30].mxu0 }
 0x130   :  { %v713_v22 = vmul.f32 0.2, %v478_v19  ;;  %vm681_vm15 = vcmp.ge.f32.partialorder %v606_v20, 0.0  ;;  %v779_v23 = vsel %vm651_vm12, %v1008_v15, %v715_v18  ;;  %v745_v24 = vmul.f32 0.2, %v606_v20  ;;  %v1041_v26 = vpop.f32.mrb[30].mxu1 }
 0x131   :  { %844 = vst.msk [vmem:[%s1491_s2 + $0xf0] sm:$0xff] %vm813_vm0, %v779_v23  ;;  %v811_v27 = vsel %vm683_vm13, %v1040_v16, %v747_v21  ;;  %vm652_vm1 = vcmp.ge.f32.partialorder %v1009_v25, 0.0  ;;  %v716_v29 = vmul.f32 0.2, %v1009_v25  ;;  %v481_v30 = vpop.f32.mrb[31].mxu0  ;;  %v609_v31 = vpop.f32.mrb[31].mxu1 }
 0x132   :  { %v777_v28 = vsel %vm649_vm14, %v478_v19, %v713_v22  ;;  %876 = vst.msk [vmem:[%s1491_s2 + $0x1f0] sm:$0xff] %vm813_vm0, %v811_v27  ;;  %v809_v32 = vsel %vm681_vm15, %v606_v20, %v745_v24  ;;  %vm684_vm2 = vcmp.ge.f32.partialorder %v1041_v26, 0.0  ;;  %v748_v33 = vmul.f32 0.2, %v1041_v26 }
 0x133   :  { %842 = vst.msk [vmem:[%s1491_s2 + $0xe0] sm:$0xff] %vm813_vm0, %v777_v28  ;;  %vm650_vm3 = vcmp.ge.f32.partialorder %v481_v30, 0.0  ;;  %874 = vst.msk [vmem:[%s1491_s2 + $0x1e0] sm:$0xff] %vm813_vm0, %v809_v32  ;;  %v780_v34 = vsel %vm652_vm1, %v1009_v25, %v716_v29  ;;  %v714_v35 = vmul.f32 0.2, %v481_v30  ;;  %vm682_vm4 = vcmp.ge.f32.partialorder %v609_v31, 0.0 }
 0x134   :  { %v746_v36 = vmul.f32 0.2, %v609_v31  ;;  %845 = vst.msk [vmem:[%s1491_s2 + $0xf8] sm:$0xff] %vm813_vm0, %v780_v34  ;;  %v812_v37 = vsel %vm684_vm2, %v1041_v26, %v748_v33 }
 0x135   :  { %877 = vst.msk [vmem:[%s1491_s2 + $0x1f8] sm:$0xff] %vm813_vm0, %v812_v37  ;;  %v778_v38 = vsel %vm650_vm3, %v481_v30, %v714_v35 }
 0x136   :  { %v810_v39 = vsel %vm682_vm4, %v609_v31, %v746_v36  ;;  %843 = vst.msk [vmem:[%s1491_s2 + $0xe8] sm:$0xff] %vm813_vm0, %v778_v38 }
 0x137   :  { %875 = vst.msk [vmem:[%s1491_s2 + $0x1e8] sm:$0xff] %vm813_vm0, %v810_v39 }

// kernel: discriminator_forward.6
= control target key start
LH: loop header
LB: loop body
LE: loop exit
PB: predicated region body
PF: predicated region fallthrough
CT: control target
= control target key end

     0   :  { %vm381_vm0 = vcmask 261120   ;;  %s729_s1 = inlined_call_operand.vmem [shape: bf16[256,32], index: 1, kind: input, shape index: {}]   ;;  %s730_s0 = inlined_call_operand.vmem [shape: bf16[128,256], index: 0, kind: input, shape index: {}]   ;;  %s731_s2 = inlined_call_operand.vmem [shape: f32[128,32], index: 2, kind: output, shape index: {}]  }
   0x1   :  { %v514_v0 = vld [vmem:[%s729_s1 + $0x40] sm:$0xff]   ;;  %v516_v2 = vld [vmem:[%s729_s1 + $0x48] sm:$0xff]   ;;  %v518_v4 = vld [vmem:[%s729_s1 + $0x50] sm:$0xff]  }
   0x2   :  { %v515_v1 = vld [vmem:[%s729_s1] sm:$0xff]   ;;  %434 = vmatprep.subr.bf16.mxu0 %v514_v0  ;;  %498 = vmatprep.subr.bf16.mxu1 %v514_v0  ;;  %v517_v3 = vld [vmem:[%s729_s1 + $0x8] sm:$0xff]   ;;  %v519_v5 = vld [vmem:[%s729_s1 + $0x10] sm:$0xff]  }
   0x3   :  { %435 = vmatpush3.bf16.msra.mxu0 %v515_v1  ;;  %506 = vmatpush3.bf16.msra.mxu1 %v515_v1  ;;  %v520_v6 = vld [vmem:[%s729_s1 + $0x58] sm:$0xff]   ;;  %v522_v8 = vld [vmem:[%s729_s1 + $0x60] sm:$0xff]   ;;  %v524_v10 = vld [vmem:[%s729_s1 + $0x68] sm:$0xff]  }
   0x4   :  { %436 = vmatprep.subr.bf16.mxu0 %v516_v2  ;;  %499 = vmatprep.subr.bf16.mxu1 %v516_v2  ;;  %v521_v7 = vld [vmem:[%s729_s1 + $0x18] sm:$0xff]   ;;  %v523_v9 = vld [vmem:[%s729_s1 + $0x20] sm:$0xff]   ;;  %v525_v13 = vld [vmem:[%s729_s1 + $0x28] sm:$0xff]  }
   0x5   :  { %v532_v11 = vld [vmem:[%s730_s0 + $0x4] ss:$8 sps:$4 sm:$0xff]   ;;  %v526_v14 = vld [vmem:[%s729_s1 + $0x70] sm:$0xff]   ;;  %v528_v16 = vld [vmem:[%s729_s1 + $0x78] sm:$0xff]  }
   0x6   :  { %v535_v12 = vld [vmem:[%s730_s0 + $0x44] ss:$8 sps:$4 sm:$0xff]   ;;  %268 = vmatprep.mubr.bf16.mxu0 %v532_v11  ;;  %v527_v15 = vld [vmem:[%s729_s1 + $0x30] sm:$0xff]   ;;  %v529_v17 = vld [vmem:[%s729_s1 + $0x38] sm:$0xff]  }
   0x7   :  { %437 = vmatpush3.bf16.msra.mxu0 %v517_v3  ;;  %507 = vmatpush3.bf16.msra.mxu1 %v517_v3  ;;  %v530_v18 = vld [vmem:[%s730_s0] ss:$8 sps:$4 sm:$0xff]   ;;  %v536_v20 = vld [vmem:[%s730_s0 + $0x14] ss:$8 sps:$4 sm:$0xff]   ;;  %v540_v22 = vld [vmem:[%s730_s0 + $0x10] ss:$8 sps:$4 sm:$0xff]  }
   0x8   :  { %438 = vmatprep.subr.bf16.mxu0 %v518_v4  ;;  %500 = vmatprep.subr.bf16.mxu1 %v518_v4  ;;  %v533_v19 = vld [vmem:[%s730_s0 + $0x40] ss:$8 sps:$4 sm:$0xff]   ;;  %v538_v21 = vld [vmem:[%s730_s0 + $0x54] ss:$8 sps:$4 sm:$0xff]   ;;  %v541_v23 = vld [vmem:[%s730_s0 + $0x50] ss:$8 sps:$4 sm:$0xff]  }
   0x9   :  { %300 = vmatprep.mubr.bf16.mxu1 %v535_v12  ;;  %v542_v24 = vld [vmem:[%s730_s0 + $0x24] ss:$8 sps:$4 sm:$0xff]   ;;  %v546_v26 = vld [vmem:[%s730_s0 + $0x20] ss:$8 sps:$4 sm:$0xff]   ;;  %v548_v28 = vld [vmem:[%s730_s0 + $0x34] ss:$8 sps:$4 sm:$0xff]  }
   0xa   :  { %v544_v25 = vld [vmem:[%s730_s0 + $0x64] ss:$8 sps:$4 sm:$0xff]   ;;  %v547_v27 = vld [vmem:[%s730_s0 + $0x60] ss:$8 sps:$4 sm:$0xff]   ;;  %v550_v29 = vld [vmem:[%s730_s0 + $0x74] ss:$8 sps:$4 sm:$0xff]  }
   0xb   :  { %439 = vmatpush3.bf16.msra.mxu0 %v519_v5  ;;  %508 = vmatpush3.bf16.msra.mxu1 %v519_v5  ;;  %v552_v30 = vld [vmem:[%s730_s0 + $0x30] ss:$8 sps:$4 sm:$0xff]  }
   0xc   :  { %440 = vmatprep.subr.bf16.mxu0 %v520_v6  ;;  %501 = vmatprep.subr.bf16.mxu1 %v520_v6  ;;  %v553_v31 = vld [vmem:[%s730_s0 + $0x70] ss:$8 sps:$4 sm:$0xff]  }
   0xf   :  { %441 = vmatpush3.bf16.msra.mxu0 %v521_v7  ;;  %509 = vmatpush3.bf16.msra.mxu1 %v521_v7 }
  0x10   :  { %442 = vmatprep.subr.bf16.mxu0 %v522_v8  ;;  %502 = vmatprep.subr.bf16.mxu1 %v522_v8 }
  0x13   :  { %443 = vmatpush3.bf16.msra.mxu0 %v523_v9  ;;  %510 = vmatpush3.bf16.msra.mxu1 %v523_v9 }
  0x14   :  { %444 = vmatprep.subr.bf16.mxu0 %v524_v10  ;;  %503 = vmatprep.subr.bf16.mxu1 %v524_v10 }
  0x17   :  { %445 = vmatpush3.bf16.msra.mxu0 %v525_v13  ;;  %511 = vmatpush3.bf16.msra.mxu1 %v525_v13 }
  0x18   :  { %446 = vmatprep.subr.bf16.mxu0 %v526_v14  ;;  %504 = vmatprep.subr.bf16.mxu1 %v526_v14 }
  0x1b   :  { %447 = vmatpush3.bf16.msra.mxu0 %v527_v15  ;;  %512 = vmatpush3.bf16.msra.mxu1 %v527_v15 }
  0x1c   :  { %448 = vmatprep.subr.bf16.mxu0 %v528_v16  ;;  %505 = vmatprep.subr.bf16.mxu1 %v528_v16 }
  0x1f   :  { %449 = vmatpush3.bf16.msra.mxu0 %v529_v17  ;;  %513 = vmatpush3.bf16.msra.mxu1 %v529_v17 }
  0x22   :  { %269 = vmatmul.mubr.bf16.vlgmr.msra.gmra.mrb[0].mxu0 %v530_v18  ;;  %301 = vmatmul.mubr.bf16.vlgmr.msra.gmra.mrb[0].mxu1 %v533_v19 }
  0x23   :  { %276 = vmatprep.mubr.bf16.mxu0 %v536_v20  ;;  %308 = vmatprep.mubr.bf16.mxu1 %v538_v21 }
  0x2a   :  { %277 = vmatmul.mubr.bf16.gmra.mrb[4].mxu0 %v540_v22  ;;  %309 = vmatmul.mubr.bf16.gmra.mrb[4].mxu1 %v541_v23 }
  0x2b   :  { %284 = vmatprep.mubr.bf16.mxu0 %v542_v24  ;;  %316 = vmatprep.mubr.bf16.mxu1 %v544_v25 }
  0x32   :  { %285 = vmatmul.mubr.bf16.gmra.mrb[8].mxu0 %v546_v26  ;;  %317 = vmatmul.mubr.bf16.gmra.mrb[8].mxu1 %v547_v27 }
  0x33   :  { %292 = vmatprep.mubr.bf16.mxu0 %v548_v28  ;;  %324 = vmatprep.mubr.bf16.mxu1 %v550_v29 }
  0x3a   :  { %293 = vmatmul.mubr.bf16.gmra.mrb[12].mxu0 %v552_v30  ;;  %325 = vmatmul.mubr.bf16.gmra.mrb[12].mxu1 %v553_v31 }
  0xf5   :  { %v450_v32 = vpop.f32.mrb[0].mxu0  ;;  %v474_v33 = vpop.f32.mrb[0].mxu1 }
  0xf6   :  { %v451_v34 = vpop.f32.mrb[1].mxu0  ;;  %v475_v35 = vpop.f32.mrb[1].mxu1 }
  0xf7   :  { %v452_v36 = vadd.f32 %v451_v34, %v450_v32  ;;  %v476_v37 = vadd.f32 %v475_v35, %v474_v33  ;;  %v453_v38 = vpop.f32.mrb[2].mxu0  ;;  %v477_v39 = vpop.f32.mrb[2].mxu1 }
  0xf8   :  { %v454_v40 = vpop.f32.mrb[3].mxu0  ;;  %v478_v41 = vpop.f32.mrb[3].mxu1 }
  0xf9   :  { %vm333_vm1 = vcmp.ge.f32.partialorder %v452_v36, 0.0  ;;  %v349_v42 = vmul.f32 0.2, %v452_v36  ;;  %vm341_vm2 = vcmp.ge.f32.partialorder %v476_v37, 0.0  ;;  %v357_v43 = vmul.f32 0.2, %v476_v37 }
  0xfa   :  { %v455_v44 = vadd.f32 %v454_v40, %v453_v38  ;;  %v479_v45 = vadd.f32 %v478_v41, %v477_v39 }
  0xfb   :  { %v365_v46 = vsel %vm333_vm1, %v452_v36, %v349_v42  ;;  %v373_v47 = vsel %vm341_vm2, %v476_v37, %v357_v43 }
  0xfc   :  { %382 = vst.msk [vmem:[%s731_s2] sm:$0xff] %vm381_vm0, %v365_v46  ;;  %390 = vst.msk [vmem:[%s731_s2 + $0x40] sm:$0xff] %vm381_vm0, %v373_v47  ;;  %vm334_vm3 = vcmp.ge.f32.partialorder %v455_v44, 0.0  ;;  %v350_v48 = vmul.f32 0.2, %v455_v44  ;;  %vm342_vm4 = vcmp.ge.f32.partialorder %v479_v45, 0.0 }
  0xfd   :  { %v358_v49 = vmul.f32 0.2, %v479_v45  ;;  %v456_v50 = vpop.f32.mrb[4].mxu0  ;;  %v480_v51 = vpop.f32.mrb[4].mxu1 }
  0xfe   :  { %v366_v52 = vsel %vm334_vm3, %v455_v44, %v350_v48  ;;  %v457_v54 = vpop.f32.mrb[5].mxu0  ;;  %v481_v55 = vpop.f32.mrb[5].mxu1 }
  0xff   :  { %v374_v53 = vsel %vm342_vm4, %v479_v45, %v358_v49  ;;  %383 = vst.msk [vmem:[%s731_s2 + $0x8] sm:$0xff] %vm381_vm0, %v366_v52  ;;  %v458_v56 = vadd.f32 %v457_v54, %v456_v50  ;;  %v482_v57 = vadd.f32 %v481_v55, %v480_v51  ;;  %v459_v58 = vpop.f32.mrb[6].mxu0  ;;  %v483_v59 = vpop.f32.mrb[6].mxu1 }
 0x100   :  { %391 = vst.msk [vmem:[%s731_s2 + $0x48] sm:$0xff] %vm381_vm0, %v374_v53  ;;  %v460_v60 = vpop.f32.mrb[7].mxu0  ;;  %v484_v61 = vpop.f32.mrb[7].mxu1 }
 0x101   :  { %vm335_vm5 = vcmp.ge.f32.partialorder %v458_v56, 0.0  ;;  %v351_v62 = vmul.f32 0.2, %v458_v56  ;;  %vm343_vm6 = vcmp.ge.f32.partialorder %v482_v57, 0.0  ;;  %v359_v63 = vmul.f32 0.2, %v482_v57 }
 0x102   :  { %v461_v0 = vadd.f32 %v460_v60, %v459_v58  ;;  %v485_v1 = vadd.f32 %v484_v61, %v483_v59 }
 0x103   :  { %v367_v2 = vsel %vm335_vm5, %v458_v56, %v351_v62  ;;  %v375_v3 = vsel %vm343_vm6, %v482_v57, %v359_v63 }
 0x104   :  { %384 = vst.msk [vmem:[%s731_s2 + $0x10] sm:$0xff] %vm381_vm0, %v367_v2  ;;  %392 = vst.msk [vmem:[%s731_s2 + $0x50] sm:$0xff] %vm381_vm0, %v375_v3  ;;  %vm336_vm7 = vcmp.ge.f32.partialorder %v461_v0, 0.0  ;;  %v352_v4 = vmul.f32 0.2, %v461_v0  ;;  %vm344_vm8 = vcmp.ge.f32.partialorder %v485_v1, 0.0 }
 0x105   :  { %v360_v5 = vmul.f32 0.2, %v485_v1  ;;  %v462_v6 = vpop.f32.mrb[8].mxu0  ;;  %v486_v7 = vpop.f32.mrb[8].mxu1 }
 0x106   :  { %v368_v8 = vsel %vm336_vm7, %v461_v0, %v352_v4  ;;  %v463_v10 = vpop.f32.mrb[9].mxu0  ;;  %v487_v11 = vpop.f32.mrb[9].mxu1 }
 0x107   :  { %v376_v9 = vsel %vm344_vm8, %v485_v1, %v360_v5  ;;  %385 = vst.msk [vmem:[%s731_s2 + $0x18] sm:$0xff] %vm381_vm0, %v368_v8  ;;  %v464_v12 = vadd.f32 %v463_v10, %v462_v6  ;;  %v488_v13 = vadd.f32 %v487_v11, %v486_v7  ;;  %v465_v14 = vpop.f32.mrb[10].mxu0  ;;  %v489_v15 = vpop.f32.mrb[10].mxu1 }
 0x108   :  { %393 = vst.msk [vmem:[%s731_s2 + $0x58] sm:$0xff] %vm381_vm0, %v376_v9  ;;  %v466_v16 = vpop.f32.mrb[11].mxu0  ;;  %v490_v17 = vpop.f32.mrb[11].mxu1 }
 0x109   :  { %vm337_vm9 = vcmp.ge.f32.partialorder %v464_v12, 0.0  ;;  %v353_v18 = vmul.f32 0.2, %v464_v12  ;;  %vm345_vm10 = vcmp.ge.f32.partialorder %v488_v13, 0.0  ;;  %v361_v19 = vmul.f32 0.2, %v488_v13 }
 0x10a   :  { %v467_v20 = vadd.f32 %v466_v16, %v465_v14  ;;  %v491_v21 = vadd.f32 %v490_v17, %v489_v15 }
 0x10b   :  { %v369_v22 = vsel %vm337_vm9, %v464_v12, %v353_v18  ;;  %v377_v23 = vsel %vm345_vm10, %v488_v13, %v361_v19 }
 0x10c   :  { %386 = vst.msk [vmem:[%s731_s2 + $0x20] sm:$0xff] %vm381_vm0, %v369_v22  ;;  %394 = vst.msk [vmem:[%s731_s2 + $0x60] sm:$0xff] %vm381_vm0, %v377_v23  ;;  %vm338_vm11 = vcmp.ge.f32.partialorder %v467_v20, 0.0  ;;  %v354_v24 = vmul.f32 0.2, %v467_v20  ;;  %vm346_vm12 = vcmp.ge.f32.partialorder %v491_v21, 0.0 }
 0x10d   :  { %v362_v25 = vmul.f32 0.2, %v491_v21  ;;  %v468_v26 = vpop.f32.mrb[12].mxu0  ;;  %v492_v27 = vpop.f32.mrb[12].mxu1 }
 0x10e   :  { %v370_v28 = vsel %vm338_vm11, %v467_v20, %v354_v24  ;;  %v469_v30 = vpop.f32.mrb[13].mxu0  ;;  %v493_v31 = vpop.f32.mrb[13].mxu1 }
 0x10f   :  { %v378_v29 = vsel %vm346_vm12, %v491_v21, %v362_v25  ;;  %387 = vst.msk [vmem:[%s731_s2 + $0x28] sm:$0xff] %vm381_vm0, %v370_v28  ;;  %v470_v32 = vadd.f32 %v469_v30, %v468_v26  ;;  %v494_v33 = vadd.f32 %v493_v31, %v492_v27  ;;  %v471_v34 = vpop.f32.mrb[14].mxu0  ;;  %v495_v35 = vpop.f32.mrb[14].mxu1 }
 0x110   :  { %395 = vst.msk [vmem:[%s731_s2 + $0x68] sm:$0xff] %vm381_vm0, %v378_v29  ;;  %v472_v36 = vpop.f32.mrb[15].mxu0  ;;  %v496_v37 = vpop.f32.mrb[15].mxu1 }
 0x111   :  { %vm339_vm13 = vcmp.ge.f32.partialorder %v470_v32, 0.0  ;;  %v355_v38 = vmul.f32 0.2, %v470_v32  ;;  %vm347_vm14 = vcmp.ge.f32.partialorder %v494_v33, 0.0  ;;  %v363_v39 = vmul.f32 0.2, %v494_v33 }
 0x112   :  { %v473_v40 = vadd.f32 %v472_v36, %v471_v34  ;;  %v497_v41 = vadd.f32 %v496_v37, %v495_v35 }
 0x113   :  { %v371_v42 = vsel %vm339_vm13, %v470_v32, %v355_v38  ;;  %v379_v43 = vsel %vm347_vm14, %v494_v33, %v363_v39 }
 0x114   :  { %388 = vst.msk [vmem:[%s731_s2 + $0x30] sm:$0xff] %vm381_vm0, %v371_v42  ;;  %396 = vst.msk [vmem:[%s731_s2 + $0x70] sm:$0xff] %vm381_vm0, %v379_v43  ;;  %vm340_vm15 = vcmp.ge.f32.partialorder %v473_v40, 0.0  ;;  %v356_v44 = vmul.f32 0.2, %v473_v40  ;;  %vm348_vm1 = vcmp.ge.f32.partialorder %v497_v41, 0.0 }
 0x115   :  { %v364_v45 = vmul.f32 0.2, %v497_v41 }
 0x116   :  { %v372_v46 = vsel %vm340_vm15, %v473_v40, %v356_v44 }
 0x117   :  { %v380_v47 = vsel %vm348_vm1, %v497_v41, %v364_v45  ;;  %389 = vst.msk [vmem:[%s731_s2 + $0x38] sm:$0xff] %vm381_vm0, %v372_v46 }
 0x118   :  { %397 = vst.msk [vmem:[%s731_s2 + $0x78] sm:$0xff] %vm381_vm0, %v380_v47 }

// kernel: discriminator_forward.7
= control target key start
LH: loop header
LB: loop body
LE: loop exit
PB: predicated region body
PF: predicated region fallthrough
CT: control target
= control target key end

     0   :  { %vm1173_vm0 = vmmov 0   ;;  %s1454_s1 = inlined_call_operand.vmem [shape: bf16[512,64], index: 1, kind: input, shape index: {}]   ;;  %s1455_s0 = inlined_call_operand.vmem [shape: bf16[128,512], index: 0, kind: input, shape index: {}]   ;;  %s1456_s2 = inlined_call_operand.vmem [shape: f32[128,64], index: 2, kind: input, shape index: {}]   ;;  %s1457_s3 = inlined_call_operand.vmem [shape: f32[8,128], index: 3, kind: input, shape index: {}]   ;;  %s1458_s4 = inlined_call_operand.vmem [shape: f32[8,1], index: 4, kind: output, shape index: {}]  }
   0x1   :  { %v1092_v0 = vld [vmem:[%s1454_s1 + $0x40] sm:$0xff]   ;;  %v1096_v4 = vld [vmem:[%s1454_s1 + $0x48] sm:$0xff]   ;;  %v1100_v8 = vld [vmem:[%s1454_s1 + $0x50] sm:$0xff]  }
   0x2   :  { %v1093_v1 = vld [vmem:[%s1454_s1 + $0xc0] sm:$0xff]   ;;  %885 = vmatprep.subr.bf16.mxu0 %v1092_v0  ;;  %v1097_v5 = vld [vmem:[%s1454_s1 + $0xc8] sm:$0xff]   ;;  %v1101_v9 = vld [vmem:[%s1454_s1 + $0xd0] sm:$0xff]   ;;  %v1172_v0 = vmov 0.0|0.0  }
   0x3   :  { %v1094_v2 = vld [vmem:[%s1454_s1] sm:$0xff]   ;;  %949 = vmatprep.subr.bf16.mxu1 %v1093_v1  ;;  %v1098_v6 = vld [vmem:[%s1454_s1 + $0x8] sm:$0xff]   ;;  %v1102_v10 = vld [vmem:[%s1454_s1 + $0x10] sm:$0xff]   ;;  %v1174_v1 = vmov 0.0  }
   0x4   :  { %v1095_v3 = vld [vmem:[%s1454_s1 + $0x80] sm:$0xff]   ;;  %886 = vmatpush3.bf16.msra.mxu0 %v1094_v2  ;;  %v1099_v7 = vld [vmem:[%s1454_s1 + $0x88] sm:$0xff]   ;;  %v1103_v11 = vld [vmem:[%s1454_s1 + $0x90] sm:$0xff]  }
   0x5   :  { %950 = vmatpush3.bf16.msra.mxu1 %v1095_v3  ;;  %887 = vmatprep.subr.bf16.mxu0 %v1096_v4  ;;  %v1104_v12 = vld [vmem:[%s1454_s1 + $0x58] sm:$0xff]   ;;  %v1108_v16 = vld [vmem:[%s1454_s1 + $0x60] sm:$0xff]   ;;  %v1112_v20 = vld [vmem:[%s1454_s1 + $0x68] sm:$0xff]  }
   0x6   :  { %951 = vmatprep.subr.bf16.mxu1 %v1097_v5  ;;  %v1105_v13 = vld [vmem:[%s1454_s1 + $0xd8] sm:$0xff]   ;;  %v1109_v17 = vld [vmem:[%s1454_s1 + $0xe0] sm:$0xff]   ;;  %v1113_v21 = vld [vmem:[%s1454_s1 + $0xe8] sm:$0xff]  }
   0x7   :  { %v1106_v14 = vld [vmem:[%s1454_s1 + $0x18] sm:$0xff]   ;;  %v1110_v18 = vld [vmem:[%s1454_s1 + $0x20] sm:$0xff]   ;;  %v1114_v22 = vld [vmem:[%s1454_s1 + $0x28] sm:$0xff]  }
   0x8   :  { %888 = vmatpush3.bf16.msra.mxu0 %v1098_v6  ;;  %v1107_v15 = vld [vmem:[%s1454_s1 + $0x98] sm:$0xff]   ;;  %v1111_v19 = vld [vmem:[%s1454_s1 + $0xa0] sm:$0xff]   ;;  %v1115_v23 = vld [vmem:[%s1454_s1 + $0xa8] sm:$0xff]  }
   0x9   :  { %952 = vmatpush3.bf16.msra.mxu1 %v1099_v7  ;;  %889 = vmatprep.subr.bf16.mxu0 %v1100_v8  ;;  %v1116_v24 = vld [vmem:[%s1454_s1 + $0x70] sm:$0xff]   ;;  %v1120_v28 = vld [vmem:[%s1454_s1 + $0x78] sm:$0xff]  }
   0xa   :  { %953 = vmatprep.subr.bf16.mxu1 %v1101_v9  ;;  %v1117_v25 = vld [vmem:[%s1454_s1 + $0xf0] sm:$0xff]   ;;  %v1121_v29 = vld [vmem:[%s1454_s1 + $0xf8] sm:$0xff]  }
   0xb   :  { %v1118_v26 = vld [vmem:[%s1454_s1 + $0x30] sm:$0xff]   ;;  %v1122_v30 = vld [vmem:[%s1454_s1 + $0x38] sm:$0xff]  }
   0xc   :  { %890 = vmatpush3.bf16.msra.mxu0 %v1102_v10  ;;  %v1119_v27 = vld [vmem:[%s1454_s1 + $0xb0] sm:$0xff]   ;;  %v1123_v31 = vld [vmem:[%s1454_s1 + $0xb8] sm:$0xff]  }
   0xd   :  { %954 = vmatpush3.bf16.msra.mxu1 %v1103_v11  ;;  %891 = vmatprep.subr.bf16.mxu0 %v1104_v12  ;;  %v1124_v32 = vld [vmem:[%s1455_s0] ss:$16 sps:$4 sm:$0xff]   ;;  %v1126_v33 = vld [vmem:[%s1455_s0 + $0x4] ss:$16 sps:$4 sm:$0xff]   ;;  %v1127_v34 = vld [vmem:[%s1455_s0 + $0x8] ss:$16 sps:$4 sm:$0xff]  }
   0xe   :  { %955 = vmatprep.subr.bf16.mxu1 %v1105_v13  ;;  %v1129_v35 = vld [vmem:[%s1455_s0 + $0xc] ss:$16 sps:$4 sm:$0xff]   ;;  %498 = vmatprep.mubr.bf16.mxu0 %v1126_v33  ;;  %v1130_v36 = vld [vmem:[%s1455_s0 + $0x24] ss:$16 sps:$4 sm:$0xff]   ;;  %v1134_v38 = vld [vmem:[%s1455_s0 + $0x20] ss:$16 sps:$4 sm:$0xff]  }
   0xf   :  { %595 = vmatprep.mubr.bf16.mxu1 %v1129_v35  ;;  %v1132_v37 = vld [vmem:[%s1455_s0 + $0x2c] ss:$16 sps:$4 sm:$0xff]   ;;  %v1135_v39 = vld [vmem:[%s1455_s0 + $0x28] ss:$16 sps:$4 sm:$0xff]   ;;  %v1136_v40 = vld [vmem:[%s1455_s0 + $0x44] ss:$16 sps:$4 sm:$0xff]  }
  0x10   :  { %892 = vmatpush3.bf16.msra.mxu0 %v1106_v14  ;;  %v1138_v41 = vld [vmem:[%s1455_s0 + $0x4c] ss:$16 sps:$4 sm:$0xff]   ;;  %v1140_v42 = vld [vmem:[%s1455_s0 + $0x40] ss:$16 sps:$4 sm:$0xff]   ;;  %v1141_v43 = vld [vmem:[%s1455_s0 + $0x48] ss:$16 sps:$4 sm:$0xff]  }
  0x11   :  { %956 = vmatpush3.bf16.msra.mxu1 %v1107_v15  ;;  %893 = vmatprep.subr.bf16.mxu0 %v1108_v16  ;;  %v1142_v44 = vld [vmem:[%s1455_s0 + $0x64] ss:$16 sps:$4 sm:$0xff]   ;;  %v1144_v45 = vld [vmem:[%s1455_s0 + $0x6c] ss:$16 sps:$4 sm:$0xff]   ;;  %v1146_v46 = vld [vmem:[%s1455_s0 + $0x60] ss:$16 sps:$4 sm:$0xff]  }
  0x12   :  { %957 = vmatprep.subr.bf16.mxu1 %v1109_v17  ;;  %v1147_v47 = vld [vmem:[%s1455_s0 + $0x68] ss:$16 sps:$4 sm:$0xff]   ;;  %v1148_v48 = vld [vmem:[%s1455_s0 + $0x84] ss:$16 sps:$4 sm:$0xff]   ;;  %v1150_v49 = vld [vmem:[%s1455_s0 + $0x8c] ss:$16 sps:$4 sm:$0xff]  }
  0x13   :  { %v1152_v50 = vld [vmem:[%s1455_s0 + $0x80] ss:$16 sps:$4 sm:$0xff]   ;;  %v1153_v51 = vld [vmem:[%s1455_s0 + $0x88] ss:$16 sps:$4 sm:$0xff]   ;;  %v1154_v52 = vld [vmem:[%s1455_s0 + $0xa4] ss:$16 sps:$4 sm:$0xff]  }
  0x14   :  { %894 = vmatpush3.bf16.msra.mxu0 %v1110_v18  ;;  %v1156_v53 = vld [vmem:[%s1455_s0 + $0xac] ss:$16 sps:$4 sm:$0xff]   ;;  %v1158_v54 = vld [vmem:[%s1455_s0 + $0xa0] ss:$16 sps:$4 sm:$0xff]   ;;  %v1159_v55 = vld [vmem:[%s1455_s0 + $0xa8] ss:$16 sps:$4 sm:$0xff]  }
  0x15   :  { %958 = vmatpush3.bf16.msra.mxu1 %v1111_v19  ;;  %895 = vmatprep.subr.bf16.mxu0 %v1112_v20  ;;  %v1160_v56 = vld [vmem:[%s1455_s0 + $0xc4] ss:$16 sps:$4 sm:$0xff]   ;;  %v1162_v57 = vld [vmem:[%s1455_s0 + $0xcc] ss:$16 sps:$4 sm:$0xff]   ;;  %v1164_v58 = vld [vmem:[%s1455_s0 + $0xc0] ss:$16 sps:$4 sm:$0xff]  }
  0x16   :  { %959 = vmatprep.subr.bf16.mxu1 %v1113_v21  ;;  %v1165_v59 = vld [vmem:[%s1455_s0 + $0xc8] ss:$16 sps:$4 sm:$0xff]   ;;  %v1166_v60 = vld [vmem:[%s1455_s0 + $0xe4] ss:$16 sps:$4 sm:$0xff]   ;;  %v1168_v61 = vld [vmem:[%s1455_s0 + $0xec] ss:$16 sps:$4 sm:$0xff]  }
  0x17   :  { %v1170_v62 = vld [vmem:[%s1455_s0 + $0xe0] ss:$16 sps:$4 sm:$0xff]   ;;  %v1171_v63 = vld [vmem:[%s1455_s0 + $0xe8] ss:$16 sps:$4 sm:$0xff]  }
  0x18   :  { %896 = vmatpush3.bf16.msra.mxu0 %v1114_v22  ;;  %v708_v17 = vld [vmem:[%s1456_s2] sm:$0xff]  ;;  %v709_v21 = vld [vmem:[%s1456_s2 + $0x8] sm:$0xff] }
  0x19   :  { %960 = vmatpush3.bf16.msra.mxu1 %v1115_v23  ;;  %897 = vmatprep.subr.bf16.mxu0 %v1116_v24 }
  0x1a   :  { %961 = vmatprep.subr.bf16.mxu1 %v1117_v25 }
  0x1c   :  { %898 = vmatpush3.bf16.msra.mxu0 %v1118_v26 }
  0x1d   :  { %962 = vmatpush3.bf16.msra.mxu1 %v1119_v27  ;;  %899 = vmatprep.subr.bf16.mxu0 %v1120_v28 }
  0x1e   :  { %963 = vmatprep.subr.bf16.mxu1 %v1121_v29 }
  0x20   :  { %900 = vmatpush3.bf16.msra.mxu0 %v1122_v30 }
  0x21   :  { %964 = vmatpush3.bf16.msra.mxu1 %v1123_v31  ;;  %1065 = vmatprep.subr.bf16.mxu0 %v1172_v0 }
  0x23   :  { %499 = vmatmul.mubr.bf16.vlgmr.msra.gmra.mrb[0].mxu0 %v1124_v32 }
  0x24   :  { %596 = vmatmul.mubr.bf16.vlgmr.msra.gmra.mrb[0].mxu1 %v1127_v34  ;;  %506 = vmatprep.mubr.bf16.mxu0 %v1130_v36 }
  0x25   :  { %603 = vmatprep.mubr.bf16.mxu1 %v1132_v37 }
  0x2b   :  { %507 = vmatmul.mubr.bf16.gmra.mrb[4].mxu0 %v1134_v38 }
  0x2c   :  { %604 = vmatmul.mubr.bf16.gmra.mrb[4].mxu1 %v1135_v39  ;;  %514 = vmatprep.mubr.bf16.mxu0 %v1136_v40  ;;  %v710_v40 = vld [vmem:[%s1456_s2 + $0x10] sm:$0xff] }
  0x2d   :  { %611 = vmatprep.mubr.bf16.mxu1 %v1138_v41 }
  0x33   :  { %515 = vmatmul.mubr.bf16.gmra.mrb[8].mxu0 %v1140_v42 }
  0x34   :  { %612 = vmatmul.mubr.bf16.gmra.mrb[8].mxu1 %v1141_v43  ;;  %522 = vmatprep.mubr.bf16.mxu0 %v1142_v44  ;;  %v711_v44 = vld [vmem:[%s1456_s2 + $0x18] sm:$0xff] }
  0x35   :  { %619 = vmatprep.mubr.bf16.mxu1 %v1144_v45 }
  0x3b   :  { %523 = vmatmul.mubr.bf16.gmra.mrb[12].mxu0 %v1146_v46 }
  0x3c   :  { %620 = vmatmul.mubr.bf16.gmra.mrb[12].mxu1 %v1147_v47  ;;  %530 = vmatprep.mubr.bf16.mxu0 %v1148_v48 }
  0x3d   :  { %627 = vmatprep.mubr.bf16.mxu1 %v1150_v49 }
  0x43   :  { %531 = vmatmul.mubr.bf16.gmra.mrb[16].mxu0 %v1152_v50 }
  0x44   :  { %628 = vmatmul.mubr.bf16.gmra.mrb[16].mxu1 %v1153_v51  ;;  %538 = vmatprep.mubr.bf16.mxu0 %v1154_v52 }
  0x45   :  { %635 = vmatprep.mubr.bf16.mxu1 %v1156_v53 }
  0x4b   :  { %539 = vmatmul.mubr.bf16.gmra.mrb[20].mxu0 %v1158_v54 }
  0x4c   :  { %636 = vmatmul.mubr.bf16.gmra.mrb[20].mxu1 %v1159_v55  ;;  %546 = vmatprep.mubr.bf16.mxu0 %v1160_v56 }
  0x4d   :  { %643 = vmatprep.mubr.bf16.mxu1 %v1162_v57 }
  0x53   :  { %547 = vmatmul.mubr.bf16.gmra.mrb[24].mxu0 %v1164_v58 }
  0x54   :  { %644 = vmatmul.mubr.bf16.gmra.mrb[24].mxu1 %v1165_v59  ;;  %554 = vmatprep.mubr.bf16.mxu0 %v1166_v60 }
  0x55   :  { %651 = vmatprep.mubr.bf16.mxu1 %v1168_v61 }
  0x5b   :  { %555 = vmatmul.mubr.bf16.gmra.mrb[28].mxu0 %v1170_v62 }
  0x5c   :  { %652 = vmatmul.mubr.bf16.gmra.mrb[28].mxu1 %v1171_v63  ;;  %1062 = vmatprep.mubr.msk.f32.mxu0 %vm1173_vm0, %v1174_v1  ;;  %v712_v63 = vld [vmem:[%s1456_s2 + $0x20] sm:$0xff] }
  0xf6   :  { %v901_v2 = vpop.f32.mrb[0].mxu0 }
  0xf7   :  { %v965_v3 = vpop.f32.mrb[0].mxu1  ;;  %v902_v4 = vpop.f32.mrb[1].mxu0 }
  0xf8   :  { %v903_v5 = vadd.f32 %v902_v4, %v901_v2  ;;  %v966_v6 = vpop.f32.mrb[1].mxu1  ;;  %v904_v7 = vpop.f32.mrb[2].mxu0  ;;  %v713_v4 = vld [vmem:[%s1456_s2 + $0x28] sm:$0xff] }
  0xf9   :  { %v967_v8 = vadd.f32 %v966_v6, %v965_v3  ;;  %v968_v9 = vpop.f32.mrb[2].mxu1  ;;  %v905_v10 = vpop.f32.mrb[3].mxu0 }
  0xfa   :  { %v906_v11 = vadd.f32 %v905_v10, %v904_v7  ;;  %v969_v12 = vpop.f32.mrb[3].mxu1 }
  0xfb   :  { %v598_v13 = vadd.f32 %v967_v8, %v903_v5  ;;  %v970_v14 = vadd.f32 %v969_v12, %v968_v9 }
  0xfd   :  { %vm660_vm1 = vcmp.ge.f32.partialorder %v598_v13, 0.0  ;;  %v676_v15 = vmul.f32 0.2, %v598_v13  ;;  %v601_v16 = vadd.f32 %v970_v14, %v906_v11 }
  0xfe   :  { %v907_v18 = vpop.f32.mrb[4].mxu0 }
  0xff   :  { %v692_v19 = vsel %vm660_vm1, %v598_v13, %v676_v15  ;;  %vm661_vm2 = vcmp.ge.f32.partialorder %v601_v16, 0.0  ;;  %v677_v20 = vmul.f32 0.2, %v601_v16  ;;  %v971_v22 = vpop.f32.mrb[4].mxu1  ;;  %v908_v23 = vpop.f32.mrb[5].mxu0  ;;  %vm811_vm1 = vcmask 523264  }
 0x100   :  { %v909_v24 = vadd.f32 %v908_v23, %v907_v18  ;;  %v972_v25 = vpop.f32.mrb[5].mxu1  ;;  %v910_v26 = vpop.f32.mrb[6].mxu0  ;;  %v724_v31 = vmul.f32 %v708_v17, %v692_v19  ;;  %v714_v23 = vld [vmem:[%s1456_s2 + $0x30] sm:$0xff] }
 0x101   :  { %v693_v27 = vsel %vm661_vm2, %v601_v16, %v677_v20  ;;  %v973_v28 = vadd.f32 %v972_v25, %v971_v22  ;;  %v974_v29 = vpop.f32.mrb[6].mxu1  ;;  %v911_v30 = vpop.f32.mrb[7].mxu0  ;;  %vm815_vm2 = vcmask 7168  }
 0x102   :  { %v725_v32 = vmul.f32 %v709_v21, %v693_v27  ;;  %v912_v33 = vadd.f32 %v911_v30, %v910_v26  ;;  %v975_v34 = vpop.f32.mrb[7].mxu1  ;;  %v715_v27 = vld [vmem:[%s1456_s2 + $0x38] sm:$0xff] }
 0x103   :  { %v606_v35 = vadd.f32 %v973_v28, %v909_v24  ;;  %v976_v36 = vadd.f32 %v975_v34, %v974_v29 }
 0x104   :  { %v1066_v37 = vpack.c.bf16 %v725_v32, %v724_v31 }
 0x105   :  { %vm662_vm3 = vcmp.ge.f32.partialorder %v606_v35, 0.0  ;;  %v678_v38 = vmul.f32 0.2, %v606_v35  ;;  %v609_v39 = vadd.f32 %v976_v36, %v912_v33 }
 0x106   :  { %1067 = vmatpush3.bf16.msra.mxu0 %v1066_v37  ;;  %v913_v41 = vpop.f32.mrb[8].mxu0 }
 0x107   :  { %v694_v42 = vsel %vm662_vm3, %v606_v35, %v678_v38  ;;  %vm663_vm4 = vcmp.ge.f32.partialorder %v609_v39, 0.0  ;;  %v679_v43 = vmul.f32 0.2, %v609_v39  ;;  %v977_v45 = vpop.f32.mrb[8].mxu1  ;;  %v914_v46 = vpop.f32.mrb[9].mxu0  ;;  %1068 = vmatprep.subr.bf16.mxu0 %v1172_v0 }
 0x108   :  { %v915_v47 = vadd.f32 %v914_v46, %v913_v41  ;;  %v978_v48 = vpop.f32.mrb[9].mxu1  ;;  %v916_v49 = vpop.f32.mrb[10].mxu0  ;;  %v726_v54 = vmul.f32 %v710_v40, %v694_v42  ;;  %v716_v46 = vld [vmem:[%s1456_s2 + $0x40] sm:$0xff] }
 0x109   :  { %v695_v50 = vsel %vm663_vm4, %v609_v39, %v679_v43  ;;  %v979_v51 = vadd.f32 %v978_v48, %v977_v45  ;;  %v980_v52 = vpop.f32.mrb[10].mxu1  ;;  %v917_v53 = vpop.f32.mrb[11].mxu0 }
 0x10a   :  { %v727_v55 = vmul.f32 %v711_v44, %v695_v50  ;;  %v918_v56 = vadd.f32 %v917_v53, %v916_v49  ;;  %v981_v57 = vpop.f32.mrb[11].mxu1  ;;  %v717_v50 = vld [vmem:[%s1456_s2 + $0x48] sm:$0xff] }
 0x10b   :  { %v614_v58 = vadd.f32 %v979_v51, %v915_v47  ;;  %v982_v59 = vadd.f32 %v981_v57, %v980_v52 }
 0x10c   :  { %v1069_v60 = vpack.c.bf16 %v727_v55, %v726_v54 }
 0x10d   :  { %vm664_vm5 = vcmp.ge.f32.partialorder %v614_v58, 0.0  ;;  %v680_v61 = vmul.f32 0.2, %v614_v58  ;;  %v617_v62 = vadd.f32 %v982_v59, %v918_v56 }
 0x10e   :  { %1070 = vmatpush3.bf16.msra.mxu0 %v1069_v60  ;;  %v919_v1 = vpop.f32.mrb[12].mxu0 }
 0x10f   :  { %v696_v2 = vsel %vm664_vm5, %v614_v58, %v680_v61  ;;  %vm665_vm6 = vcmp.ge.f32.partialorder %v617_v62, 0.0  ;;  %v681_v3 = vmul.f32 0.2, %v617_v62  ;;  %v983_v5 = vpop.f32.mrb[12].mxu1  ;;  %v920_v6 = vpop.f32.mrb[13].mxu0  ;;  %1071 = vmatprep.subr.bf16.mxu0 %v1172_v0 }
 0x110   :  { %v921_v7 = vadd.f32 %v920_v6, %v919_v1  ;;  %v984_v8 = vpop.f32.mrb[13].mxu1  ;;  %v922_v9 = vpop.f32.mrb[14].mxu0  ;;  %v728_v14 = vmul.f32 %v712_v63, %v696_v2  ;;  %v718_v6 = vld [vmem:[%s1456_s2 + $0x50] sm:$0xff] }
 0x111   :  { %v697_v10 = vsel %vm665_vm6, %v617_v62, %v681_v3  ;;  %v985_v11 = vadd.f32 %v984_v8, %v983_v5  ;;  %v986_v12 = vpop.f32.mrb[14].mxu1  ;;  %v923_v13 = vpop.f32.mrb[15].mxu0 }
 0x112   :  { %v729_v15 = vmul.f32 %v713_v4, %v697_v10  ;;  %v924_v16 = vadd.f32 %v923_v13, %v922_v9  ;;  %v987_v17 = vpop.f32.mrb[15].mxu1  ;;  %v719_v10 = vld [vmem:[%s1456_s2 + $0x58] sm:$0xff] }
 0x113   :  { %v622_v18 = vadd.f32 %v985_v11, %v921_v7  ;;  %v988_v19 = vadd.f32 %v987_v17, %v986_v12 }
 0x114   :  { %v1072_v20 = vpack.c.bf16 %v729_v15, %v728_v14 }
 0x115   :  { %vm666_vm7 = vcmp.ge.f32.partialorder %v622_v18, 0.0  ;;  %v682_v21 = vmul.f32 0.2, %v622_v18  ;;  %v625_v22 = vadd.f32 %v988_v19, %v924_v16 }
 0x116   :  { %1073 = vmatpush3.bf16.msra.mxu0 %v1072_v20  ;;  %v925_v24 = vpop.f32.mrb[16].mxu0 }
 0x117   :  { %v698_v25 = vsel %vm666_vm7, %v622_v18, %v682_v21  ;;  %vm667_vm8 = vcmp.ge.f32.partialorder %v625_v22, 0.0  ;;  %v683_v26 = vmul.f32 0.2, %v625_v22  ;;  %v989_v28 = vpop.f32.mrb[16].mxu1  ;;  %v926_v29 = vpop.f32.mrb[17].mxu0  ;;  %1074 = vmatprep.subr.bf16.mxu0 %v1172_v0 }
 0x118   :  { %v927_v30 = vadd.f32 %v926_v29, %v925_v24  ;;  %v990_v31 = vpop.f32.mrb[17].mxu1  ;;  %v928_v32 = vpop.f32.mrb[18].mxu0  ;;  %v730_v37 = vmul.f32 %v714_v23, %v698_v25  ;;  %v720_v29 = vld [vmem:[%s1456_s2 + $0x60] sm:$0xff] }
 0x119   :  { %v699_v33 = vsel %vm667_vm8, %v625_v22, %v683_v26  ;;  %v991_v34 = vadd.f32 %v990_v31, %v989_v28  ;;  %v992_v35 = vpop.f32.mrb[18].mxu1  ;;  %v929_v36 = vpop.f32.mrb[19].mxu0 }
 0x11a   :  { %v731_v38 = vmul.f32 %v715_v27, %v699_v33  ;;  %v930_v39 = vadd.f32 %v929_v36, %v928_v32  ;;  %v993_v40 = vpop.f32.mrb[19].mxu1  ;;  %v721_v33 = vld [vmem:[%s1456_s2 + $0x68] sm:$0xff] }
 0x11b   :  { %v630_v41 = vadd.f32 %v991_v34, %v927_v30  ;;  %v994_v42 = vadd.f32 %v993_v40, %v992_v35 }
 0x11c   :  { %v1075_v43 = vpack.c.bf16 %v731_v38, %v730_v37 }
 0x11d   :  { %vm668_vm9 = vcmp.ge.f32.partialorder %v630_v41, 0.0  ;;  %v684_v44 = vmul.f32 0.2, %v630_v41  ;;  %v633_v45 = vadd.f32 %v994_v42, %v930_v39 }
 0x11e   :  { %1076 = vmatpush3.bf16.msra.mxu0 %v1075_v43  ;;  %v931_v47 = vpop.f32.mrb[20].mxu0 }
 0x11f   :  { %v700_v48 = vsel %vm668_vm9, %v630_v41, %v684_v44  ;;  %vm669_vm10 = vcmp.ge.f32.partialorder %v633_v45, 0.0  ;;  %v685_v49 = vmul.f32 0.2, %v633_v45  ;;  %v995_v51 = vpop.f32.mrb[20].mxu1  ;;  %v932_v52 = vpop.f32.mrb[21].mxu0  ;;  %1077 = vmatprep.subr.bf16.mxu0 %v1172_v0 }
 0x120   :  { %v933_v53 = vadd.f32 %v932_v52, %v931_v47  ;;  %v996_v54 = vpop.f32.mrb[21].mxu1  ;;  %v934_v55 = vpop.f32.mrb[22].mxu0  ;;  %v732_v60 = vmul.f32 %v716_v46, %v700_v48 }
 0x121   :  { %v701_v56 = vsel %vm669_vm10, %v633_v45, %v685_v49  ;;  %v997_v57 = vadd.f32 %v996_v54, %v995_v51  ;;  %v998_v58 = vpop.f32.mrb[22].mxu1  ;;  %v935_v59 = vpop.f32.mrb[23].mxu0 }
 0x122   :  { %v733_v61 = vmul.f32 %v717_v50, %v701_v56  ;;  %v936_v62 = vadd.f32 %v935_v59, %v934_v55  ;;  %v999_v63 = vpop.f32.mrb[23].mxu1  ;;  %v723_v55 = vld [vmem:[%s1456_s2 + $0x78] sm:$0xff] }
 0x123   :  { %v638_v1 = vadd.f32 %v997_v57, %v933_v53  ;;  %v1000_v2 = vadd.f32 %v999_v63, %v998_v58  ;;  %v722_v53 = vld [vmem:[%s1456_s2 + $0x70] sm:$0xff] }
 0x124   :  { %v1078_v3 = vpack.c.bf16 %v733_v61, %v732_v60  ;;  %v740_v60 = vld [vmem:[%s1457_s3] sm:$0xff] }
 0x125   :  { %vm670_vm11 = vcmp.ge.f32.partialorder %v638_v1, 0.0  ;;  %v686_v4 = vmul.f32 0.2, %v638_v1  ;;  %v641_v5 = vadd.f32 %v1000_v2, %v936_v62 }
 0x126   :  { %1079 = vmatpush3.bf16.msra.mxu0 %v1078_v3  ;;  %v937_v7 = vpop.f32.mrb[24].mxu0 }
 0x127   :  { %v702_v8 = vsel %vm670_vm11, %v638_v1, %v686_v4  ;;  %vm671_vm12 = vcmp.ge.f32.partialorder %v641_v5, 0.0  ;;  %v687_v9 = vmul.f32 0.2, %v641_v5  ;;  %v1001_v11 = vpop.f32.mrb[24].mxu1  ;;  %v938_v12 = vpop.f32.mrb[25].mxu0  ;;  %1080 = vmatprep.subr.bf16.mxu0 %v1172_v0 }
 0x128   :  { %v939_v13 = vadd.f32 %v938_v12, %v937_v7  ;;  %v1002_v14 = vpop.f32.mrb[25].mxu1  ;;  %v940_v15 = vpop.f32.mrb[26].mxu0  ;;  %v734_v20 = vmul.f32 %v718_v6, %v702_v8 }
 0x129   :  { %v703_v16 = vsel %vm671_vm12, %v641_v5, %v687_v9  ;;  %v1003_v17 = vadd.f32 %v1002_v14, %v1001_v11  ;;  %v1004_v18 = vpop.f32.mrb[26].mxu1  ;;  %v941_v19 = vpop.f32.mrb[27].mxu0 }
 0x12a   :  { %v735_v21 = vmul.f32 %v719_v10, %v703_v16  ;;  %v942_v22 = vadd.f32 %v941_v19, %v940_v15  ;;  %v1005_v23 = vpop.f32.mrb[27].mxu1 }
 0x12b   :  { %v646_v24 = vadd.f32 %v1003_v17, %v939_v13  ;;  %v1006_v25 = vadd.f32 %v1005_v23, %v1004_v18 }
 0x12c   :  { %v1081_v26 = vpack.c.bf16 %v735_v21, %v734_v20 }
 0x12d   :  { %vm672_vm13 = vcmp.ge.f32.partialorder %v646_v24, 0.0  ;;  %v688_v27 = vmul.f32 0.2, %v646_v24  ;;  %v649_v28 = vadd.f32 %v1006_v25, %v942_v22 }
 0x12e   :  { %1082 = vmatpush3.bf16.msra.mxu0 %v1081_v26  ;;  %v943_v30 = vpop.f32.mrb[28].mxu0 }
 0x12f   :  { %v704_v31 = vsel %vm672_vm13, %v646_v24, %v688_v27  ;;  %vm673_vm14 = vcmp.ge.f32.partialorder %v649_v28, 0.0  ;;  %v689_v32 = vmul.f32 0.2, %v649_v28  ;;  %v1007_v34 = vpop.f32.mrb[28].mxu1  ;;  %v944_v35 = vpop.f32.mrb[29].mxu0  ;;  %1083 = vmatprep.subr.bf16.mxu0 %v1172_v0 }
 0x130   :  { %v945_v36 = vadd.f32 %v944_v35, %v943_v30  ;;  %v1008_v37 = vpop.f32.mrb[29].mxu1  ;;  %v946_v38 = vpop.f32.mrb[30].mxu0  ;;  %v736_v43 = vmul.f32 %v720_v29, %v704_v31 }
 0x131   :  { %v705_v39 = vsel %vm673_vm14, %v649_v28, %v689_v32  ;;  %v1009_v40 = vadd.f32 %v1008_v37, %v1007_v34  ;;  %v1010_v41 = vpop.f32.mrb[30].mxu1  ;;  %v947_v42 = vpop.f32.mrb[31].mxu0 }
 0x132   :  { %v737_v44 = vmul.f32 %v721_v33, %v705_v39  ;;  %v948_v45 = vadd.f32 %v947_v42, %v946_v38  ;;  %v1011_v46 = vpop.f32.mrb[31].mxu1 }
 0x133   :  { %v654_v47 = vadd.f32 %v1009_v40, %v945_v36  ;;  %v1012_v48 = vadd.f32 %v1011_v46, %v1010_v41 }
 0x134   :  { %v1084_v49 = vpack.c.bf16 %v737_v44, %v736_v43 }
 0x135   :  { %vm674_vm15 = vcmp.ge.f32.partialorder %v654_v47, 0.0  ;;  %v690_v50 = vmul.f32 0.2, %v654_v47  ;;  %v657_v51 = vadd.f32 %v1012_v48, %v948_v45 }
 0x136   :  { %1085 = vmatpush3.bf16.msra.mxu0 %v1084_v49 }
 0x137   :  { %v706_v52 = vsel %vm674_vm15, %v654_v47, %v690_v50  ;;  %vm675_vm0 = vcmp.ge.f32.partialorder %v657_v51, 0.0  ;;  %v691_v54 = vmul.f32 0.2, %v657_v51  ;;  %1086 = vmatprep.subr.bf16.mxu0 %v1172_v0 }
 0x138   :  { %v738_v57 = vmul.f32 %v722_v53, %v706_v52 }
 0x139   :  { %v707_v56 = vsel %vm675_vm0, %v657_v51, %v691_v54 }
 0x13a   :  { %v739_v58 = vmul.f32 %v723_v55, %v707_v56 }
 0x13c   :  { %v1087_v59 = vpack.c.bf16 %v739_v58, %v738_v57 }
 0x13e   :  { %1088 = vmatpush3.bf16.msra.mxu0 %v1087_v59 }
 0x141   :  { %1063 = vmatmul.mubr.f32.vlgmr.msra.gmra.mrb[32].mxu0 %v740_v60 }
 0x214   :  { %v807_v61 = vpop.f32.mrb[32].mxu0 }
 0x215   :  { %v1064_v62 = vpop.f32.mrb[33].mxu0  ;;  %v812_v63 = vsel %vm811_vm1, %v807_v61, 0.0 }
 0x216   :  { %813 = vadd.xlane.f32.xlu0 %v812_v63 }
 0x2a3   :  { %v814_v1 = vpop.xlane.xlu0 %813 }
 0x2a4   :  { %816 = vst.msk [vmem:[%s1458_s4] sm:$0xff] %vm815_vm2, %v814_v1 }

</bundles_post_ra>
